<compile_context>
chip_gen: v6e
topology: v6e:2x2x1
jax: 0.10.0
libtpu: 0.0.40
codegen_flags: <defaults>
</compile_context>

<pallas_src>
import functools

import jax
import jax.numpy as jnp
from jax.experimental import pallas as pl
from jax.experimental.pallas import tpu as pltpu


# ------------------------------------------------------------------
# Fused Fire kernel: per-row-tile squeeze + expand_1x1 + expand_3x3
# ------------------------------------------------------------------
def _fire_kernel(x_ref, wsq_ref, bsq_ref, we1_ref, be1_ref, we3_ref, be3_ref,
                 o_ref, s_ref):
    # x_ref:   (1, H, W, Cin)     full image of batch element n (resident across r)
    # wsq_ref: (Cin, Cs)          squeeze weight (bf16)
    # bsq_ref: (1, Cs)            squeeze folded bias (f32)
    # we1_ref: (Cs, Ce1)          expand_1x1 weight (bf16)
    # be1_ref: (1, Ce1)           expand_1x1 folded bias (f32)
    # we3_ref: (9, Cs, Ce3)       expand_3x3 weight, tap-major ky*3+kx (bf16)
    # be3_ref: (1, Ce3)           expand_3x3 folded bias (f32)
    # o_ref:   (1, TR, W, Ce1+Ce3) row tile r of the NHWC output
    # s_ref:   (TR+2, W+2, Cs)    VMEM scratch: zero-padded squeeze for this tile
    r = pl.program_id(1)
    nr = pl.num_programs(1)
    H, W, Cin = x_ref.shape[1], x_ref.shape[2], x_ref.shape[3]
    TR = o_ref.shape[1]
    Cs = wsq_ref.shape[1]
    Ce1 = we1_ref.shape[1]
    Ce3 = we3_ref.shape[2]
    Co = Ce1 + Ce3
    cdt = wsq_ref.dtype                       # matmul operand dtype (bf16)
    M = TR * W

    # ---- squeeze for this row tile (+2 halo rows, recomputed) ----
    row0 = pl.multiple_of(r * TR, TR)
    top = jnp.maximum(row0 - 1, 0)            # clamped; masked to 0 if r == 0
    bot = jnp.minimum(row0 + TR, H - 1)       # clamped; masked to 0 if r == last

    x_top = x_ref[0, pl.ds(top, 1), :, :]     # (1,  W, Cin)
    x_mid = x_ref[0, pl.ds(row0, TR), :, :]   # (TR, W, Cin)
    x_bot = x_ref[0, pl.ds(bot, 1), :, :]     # (1,  W, Cin)
    x_slab = jnp.concatenate([x_top, x_mid, x_bot], axis=0)   # (TR+2, W, Cin)

    s = jnp.dot(x_slab.reshape((TR + 2) * W, Cin).astype(cdt), wsq_ref[...],
                preferred_element_type=jnp.float32)
    s = jnp.maximum(s + bsq_ref[...], 0.0).reshape(TR + 2, W, Cs)

    # Zero the halo rows that fall outside the image (matches zero padding of
    # the squeeze activation before the 3x3 conv).
    row_ids = jax.lax.broadcasted_iota(jnp.int32, (TR + 2, 1, 1), 0)
    valid = jnp.logical_and(jnp.logical_or(row_ids != 0, r > 0),
                            jnp.logical_or(row_ids != TR + 1, r < nr - 1))
    s = jnp.where(valid, s, 0.0)

    # Zero columns left/right -> padded (TR+2, W+2, Cs), single scratch store.
    zcol = jnp.zeros((TR + 2, 1, Cs), jnp.float32)
    s_ref[...] = jnp.concatenate([zcol, s, zcol], axis=1).astype(s_ref.dtype)

    # ---- expand_3x3: 9-tap accumulation straight from the padded scratch ----
    # (no im2col patch matrix, no zero-padded MACs)
    acc3 = jnp.zeros((M, Ce3), jnp.float32) + be3_ref[...]
    for ky in range(3):
        for kx in range(3):
            tap = s_ref[ky:ky + TR, kx:kx + W, :].reshape(M, Cs)
            acc3 = acc3 + jnp.dot(tap, we3_ref[ky * 3 + kx],
                                  preferred_element_type=jnp.float32)
    e3 = jnp.maximum(acc3, 0.0)

    # ---- expand_1x1: center tap only ----
    center = s_ref[1:1 + TR, 1:1 + W, :].reshape(M, Cs)
    e1 = jnp.maximum(jnp.dot(center, we1_ref[...],
                             preferred_element_type=jnp.float32)
                     + be1_ref[...], 0.0)

    # ---- in-register channel concat, single lane-dense store ----
    y = jnp.concatenate([e1, e3], axis=-1)               # (M, Co) f32
    o_ref[...] = y.reshape(1, TR, W, Co).astype(o_ref.dtype)


def _pick_row_tile(H, W, Cin, Cs, Co, *, in_bytes=4, out_bytes=4,
                   max_pixels=2048, vmem_budget=24 * 1024 * 1024):
    """Largest divisor of H whose per-step VMEM footprint fits the budget.

    Budget is kept conservative so the same choice is safe on v7x (64 MiB
    physical VMEM, 32 MiB scoped default) as well as v5e/v6e (128 MiB).
    """
    best = 1
    for d in range(1, H + 1):
        if H % d or d * W > max_pixels:
            continue
        est = (2 * H * W * Cin * in_bytes          # double-buffered full-image x
               + 2 * d * W * Co * out_bytes        # double-buffered out tile
               + (d + 2) * (W + 2) * Cs * 2        # squeeze scratch (bf16)
               + d * W * (Cs * 2 + 2 * Co * 4))    # live tap + accumulator temps
        if est <= vmem_budget:
            best = d
    return best


# ------------------------------------------------------------------
# Wrappers
# ------------------------------------------------------------------
def fire_forward_nhwc(x_nhwc, prepared, *, row_tile=None):
    N, H, W, Cin = x_nhwc.shape
    wsq, bsq = prepared["w_sq"], prepared["b_sq"]
    we1, be1 = prepared["w_e1"], prepared["b_e1"]
    we3, be3 = prepared["w_e3"], prepared["b_e3"]
    Cs = wsq.shape[1]
    Ce1 = we1.shape[1]
    Ce3 = we3.shape[2]
    Co = Ce1 + Ce3
    assert wsq.shape[0] == Cin, (wsq.shape, Cin)

    ib = jnp.dtype(x_nhwc.dtype).itemsize
    if row_tile is None:
        row_tile = _pick_row_tile(H, W, Cin, Cs, Co, in_bytes=ib, out_bytes=ib)
    TR = int(row_tile)
    assert H % TR == 0, (H, TR)
    n_row_tiles = H // TR

    return pl.pallas_call(
        _fire_kernel,
        out_shape=jax.ShapeDtypeStruct((N, H, W, Co), x_nhwc.dtype),
        grid=(N, n_row_tiles),
        in_specs=[
            pl.BlockSpec((1, H, W, Cin), lambda n, r: (n, 0, 0, 0)),  # x (DMA once per n)
            pl.BlockSpec((Cin, Cs), lambda n, r: (0, 0)),             # w_sq
            pl.BlockSpec((1, Cs), lambda n, r: (0, 0)),               # b_sq
            pl.BlockSpec((Cs, Ce1), lambda n, r: (0, 0)),             # w_e1
            pl.BlockSpec((1, Ce1), lambda n, r: (0, 0)),              # b_e1
            pl.BlockSpec((9, Cs, Ce3), lambda n, r: (0, 0, 0)),       # w_e3
            pl.BlockSpec((1, Ce3), lambda n, r: (0, 0)),              # b_e3
        ],
        out_specs=pl.BlockSpec((1, TR, W, Co), lambda n, r: (n, r, 0, 0)),
        scratch_shapes=[pltpu.VMEM((TR + 2, W + 2, Cs), wsq.dtype)],
        compiler_params=pltpu.CompilerParams(
            # Every (n, r) step is independent (per-tile squeeze recompute), so
            # both axes are parallel -> v7x batch-1 still fills both TCs.
            dimension_semantics=("parallel", "parallel"),
            vmem_limit_bytes=32 * 1024 * 1024),
    )(x_nhwc, wsq, bsq, we1, be1, we3, be3)


def fire_forward(x_nchw, prepared, *, row_tile=None):
    # NCHW <-> NHWC only at the module boundary; a full SqueezeNet stack would
    # stay NHWC (and bf16) between Fire modules.
    x = jnp.transpose(x_nchw, (0, 2, 3, 1))
    out = fire_forward_nhwc(x, prepared, row_tile=row_tile)
    return jnp.transpose(out, (0, 3, 1, 2))


# ------------------------------------------------------------------
# Parameter prep (done once, outside the hot path)
# ------------------------------------------------------------------
def fold_conv_bn(w, b_conv, gamma, beta, mean, var, eps=1e-5):
    # Inference-mode BN folding: y = conv(x)*s + (b_conv - mean)*s + beta
    s = gamma / jnp.sqrt(var + eps)              # (Cout,)
    w_f = w * s                                  # broadcast over last (Cout) dim
    b_f = ((b_conv - mean) * s + beta).reshape(1, -1)
    return w_f.astype(jnp.float32), b_f.astype(jnp.float32)


def prepare_fire_params(params, compute_dtype=jnp.bfloat16):
    """Cast weights to the MXU compute dtype once; biases stay f32."""
    return {
        "w_sq": params["w_sq"].astype(compute_dtype),   # (Cin, Cs)
        "b_sq": params["b_sq"].astype(jnp.float32),     # (1, Cs)
        "w_e1": params["w_e1"].astype(compute_dtype),   # (Cs, Ce1)
        "b_e1": params["b_e1"].astype(jnp.float32),     # (1, Ce1)
        "w_e3": params["w_e3"].astype(compute_dtype),   # (9, Cs, Ce3)
        "b_e3": params["b_e3"].astype(jnp.float32),     # (1, Ce3)
    }


def make_params(key, in_channel, out_channel, squeeze_channel):
    half = out_channel // 2
    ks = jax.random.split(key, 18)

    def bn_params(k0, k1, k2, k3, c):
        gamma = 1.0 + 0.1 * jax.random.normal(k0, (c,), jnp.float32)
        beta = 0.1 * jax.random.normal(k1, (c,), jnp.float32)
        mean = 0.05 * jax.random.normal(k2, (c,), jnp.float32)
        var = 1.0 + 0.1 * jnp.abs(jax.random.normal(k3, (c,), jnp.float32))
        return gamma, beta, mean, var

    # squeeze 1x1:   weight (Cin, Cs)
    w_sq = 0.1 * jax.random.normal(ks[0], (in_channel, squeeze_channel), jnp.float32)
    b_sq = 0.05 * jax.random.normal(ks[1], (squeeze_channel,), jnp.float32)
    w_sq, b_sq = fold_conv_bn(w_sq, b_sq, *bn_params(ks[2], ks[3], ks[4], ks[5],
                                                     squeeze_channel))

    # expand 1x1:    weight (Cs, half)
    w_e1 = 0.1 * jax.random.normal(ks[6], (squeeze_channel, half), jnp.float32)
    b_e1 = 0.05 * jax.random.normal(ks[7], (half,), jnp.float32)
    w_e1, b_e1 = fold_conv_bn(w_e1, b_e1, *bn_params(ks[8], ks[9], ks[10], ks[11],
                                                     half))

    # expand 3x3:    weight (9, Cs, half)  (3x3 taps flattened, row-major ky*3+kx)
    w_e3 = 0.1 * jax.random.normal(ks[12], (9, squeeze_channel, half), jnp.float32)
    b_e3 = 0.05 * jax.random.normal(ks[13], (half,), jnp.float32)
    w_e3, b_e3 = fold_conv_bn(w_e3, b_e3, *bn_params(ks[14], ks[15], ks[16], ks[17],
                                                     half))

    return {"w_sq": w_sq, "b_sq": b_sq,
            "w_e1": w_e1, "b_e1": b_e1,
            "w_e3": w_e3, "b_e3": b_e3}


# ------------------------------------------------------------------
# Pure-JAX reference (same folded-BN inference math) for correctness check
# ------------------------------------------------------------------
def fire_reference(x_nchw, params):
    x = jnp.transpose(x_nchw, (0, 2, 3, 1)).astype(jnp.float32)
    N, H, W, _ = x.shape
    s = jax.nn.relu(jnp.einsum("nhwc,cd->nhwd", x, params["w_sq"])
                    + params["b_sq"][0])
    e1 = jax.nn.relu(jnp.einsum("nhwc,cd->nhwd", s, params["w_e1"])
                     + params["b_e1"][0])
    sp = jnp.pad(s, ((0, 0), (1, 1), (1, 1), (0, 0)))
    Ce3 = params["w_e3"].shape[2]
    acc = jnp.zeros((N, H, W, Ce3), jnp.float32)
    for ky in range(3):
        for kx in range(3):
            acc = acc + jnp.einsum("nhwc,cd->nhwd",
                                   sp[:, ky:ky + H, kx:kx + W, :],
                                   params["w_e3"][ky * 3 + kx])
    e3 = jax.nn.relu(acc + params["b_e3"][0])
    out = jnp.concatenate([e1, e3], axis=-1)
    return jnp.transpose(out, (0, 3, 1, 2))


if __name__ == "__main__":
    in_channel, out_channel, squeeze_channel = 8, 8, 4
    N, H, W = 2, 16, 16

    key = jax.random.PRNGKey(0)
    k_x, k_p = jax.random.split(key)
    x = jax.random.normal(k_x, (N, in_channel, H, W), jnp.float32)
    params = make_params(k_p, in_channel, out_channel, squeeze_channel)
    prepared = prepare_fire_params(params)

    ref = jax.block_until_ready(fire_reference(x, params))

    # --- f32 I/O, row_tile=8 (2 row tiles/image; exercises the halo masks) ---
    fire_f32 = jax.jit(functools.partial(fire_forward, row_tile=8))
    out = jax.block_until_ready(fire_f32(x, prepared))
    assert out.shape == (N, out_channel, H, W), out.shape
    assert out.dtype == jnp.float32
    max_err = float(jnp.max(jnp.abs(out - ref)))
    assert max_err < 5e-2, f"f32-path max abs error {max_err}"

    # --- bf16 I/O (memory-bound path), row_tile=4 (more halo boundaries) ---
    fire_bf16 = jax.jit(functools.partial(fire_forward, row_tile=4))
    out_bf16 = jax.block_until_ready(fire_bf16(x.astype(jnp.bfloat16), prepared))
    assert out_bf16.shape == (N, out_channel, H, W), out_bf16.shape
    assert out_bf16.dtype == jnp.bfloat16
    max_err_bf16 = float(jnp.max(jnp.abs(out_bf16.astype(jnp.float32) - ref)))
    assert max_err_bf16 < 1e-1, f"bf16-path max abs error {max_err_bf16}"

    print("KERNEL_OK")
</pallas_src>

<mosaic_0001>
module attributes {stable_mosaic.version = 11 : i64} {
  func.func @_fire_kernel(%arg0: i32, %arg1: i32, %arg2: memref<1x16x16x8xf32, #tpu.memory_space<vmem>>, %arg3: memref<8x4xbf16, #tpu.memory_space<vmem>>, %arg4: memref<1x4xf32, #tpu.memory_space<vmem>>, %arg5: memref<4x4xbf16, #tpu.memory_space<vmem>>, %arg6: memref<1x4xf32, #tpu.memory_space<vmem>>, %arg7: memref<9x4x4xbf16, #tpu.memory_space<vmem>>, %arg8: memref<1x4xf32, #tpu.memory_space<vmem>>, %arg9: memref<1x8x16x8xf32, #tpu.memory_space<vmem>>, %arg10: memref<10x18x4xbf16, #tpu.memory_space<vmem>>) attributes {dimension_semantics = [#tpu.dimension_semantics<parallel>, #tpu.dimension_semantics<parallel>], iteration_bounds = array<i64: 2, 2>, scalar_prefetch = 0 : i64, scratch_operands = 1 : i64, tpu.core_type = #tpu.core_type<tc>, window_params = [{transform_indices = @transform_0, window_bounds = array<i64: 1, 16, 16, 8>}, {pipeline_mode = #tpu.pipeline_mode<synchronous>, transform_indices = @transform_1, window_bounds = array<i64: 8, 4>}, {pipeline_mode = #tpu.pipeline_mode<synchronous>, transform_indices = @transform_2, window_bounds = array<i64: 1, 4>}, {pipeline_mode = #tpu.pipeline_mode<synchronous>, transform_indices = @transform_3, window_bounds = array<i64: 4, 4>}, {pipeline_mode = #tpu.pipeline_mode<synchronous>, transform_indices = @transform_4, window_bounds = array<i64: 1, 4>}, {pipeline_mode = #tpu.pipeline_mode<synchronous>, transform_indices = @transform_5, window_bounds = array<i64: 9, 4, 4>}, {pipeline_mode = #tpu.pipeline_mode<synchronous>, transform_indices = @transform_6, window_bounds = array<i64: 1, 4>}, {transform_indices = @transform_7, window_bounds = array<i64: 1, 8, 16, 8>}]} {
    %c8_i32 = arith.constant 8 : i32
    %0 = arith.muli %arg1, %c8_i32 : i32
    %1 = tpu.assume_multiple %0, 8 : i32
    %c1_i32 = arith.constant 1 : i32
    %2 = arith.subi %1, %c1_i32 : i32
    %c0_i32 = arith.constant 0 : i32
    %3 = arith.maxsi %2, %c0_i32 : i32
    %c8_i32_0 = arith.constant 8 : i32
    %4 = arith.addi %1, %c8_i32_0 : i32
    %c15_i32 = arith.constant 15 : i32
    %5 = arith.minsi %4, %c15_i32 : i32
    %c0 = arith.constant 0 : index
    %6 = arith.index_cast %3 : i32 to index
    %c0_1 = arith.constant 0 : index
    %c0_2 = arith.constant 0 : index
    %7 = vector.load %arg2[%c0, %6, %c0_1, %c0_2] : memref<1x16x16x8xf32, #tpu.memory_space<vmem>>, vector<1x1x16x8xf32>
    %8 = vector.shape_cast %7 : vector<1x1x16x8xf32> to vector<1x16x8xf32>
    %c0_3 = arith.constant 0 : index
    %9 = arith.index_cast %1 : i32 to index
    %c0_4 = arith.constant 0 : index
    %c0_5 = arith.constant 0 : index
    %10 = vector.load %arg2[%c0_3, %9, %c0_4, %c0_5] : memref<1x16x16x8xf32, #tpu.memory_space<vmem>>, vector<1x8x16x8xf32>
    %11 = vector.shape_cast %10 : vector<1x8x16x8xf32> to vector<8x16x8xf32>
    %c0_6 = arith.constant 0 : index
    %12 = arith.index_cast %5 : i32 to index
    %c0_7 = arith.constant 0 : index
    %c0_8 = arith.constant 0 : index
    %13 = vector.load %arg2[%c0_6, %12, %c0_7, %c0_8] : memref<1x16x16x8xf32, #tpu.memory_space<vmem>>, vector<1x1x16x8xf32>
    %14 = vector.shape_cast %13 : vector<1x1x16x8xf32> to vector<1x16x8xf32>
    %15 = tpu.concatenate %8, %11, %14 in 0 : vector<1x16x8xf32>, vector<8x16x8xf32>, vector<1x16x8xf32> -> vector<10x16x8xf32>
    %16 = vector.shape_cast %15 : vector<10x16x8xf32> to vector<160x8xf32>
    %17 = arith.truncf %16 : vector<160x8xf32> to vector<160x8xbf16>
    %c0_9 = arith.constant 0 : index
    %c0_10 = arith.constant 0 : index
    %18 = vector.load %arg3[%c0_9, %c0_10] : memref<8x4xbf16, #tpu.memory_space<vmem>>, vector<8x4xbf16>
    %cst = arith.constant dense<0.000000e+00> : vector<160x4xf32>
    %19 = tpu.matmul %17, %18, %cst {dimension_numbers = #tpu.dot_dimension_numbers<[1], [0], [0], [1], [0, 0, 1, 1], [], []>} : vector<160x8xbf16>, vector<8x4xbf16>, vector<160x4xf32> -> vector<160x4xf32>
    %c0_11 = arith.constant 0 : index
    %c0_12 = arith.constant 0 : index
    %20 = vector.load %arg4[%c0_11, %c0_12] : memref<1x4xf32, #tpu.memory_space<vmem>>, vector<1x4xf32>
    %21 = vector.broadcast %20 : vector<1x4xf32> to vector<160x4xf32>
    %22 = arith.addf %19, %21 : vector<160x4xf32>
    %cst_13 = arith.constant 0.000000e+00 : f32
    %23 = vector.broadcast %cst_13 : f32 to vector<160x4xf32>
    %24 = arith.maximumf %22, %23 : vector<160x4xf32>
    %25 = vector.shape_cast %24 : vector<160x4xf32> to vector<10x16x4xf32>
    %26 = tpu.iota {dimensions = array<i32: 0>} : vector<10x1x1xi32>
    %c0_i32_14 = arith.constant 0 : i32
    %27 = vector.broadcast %c0_i32_14 : i32 to vector<10x1x1xi32>
    %28 = arith.cmpi ne, %26, %27 : vector<10x1x1xi32>
    %c0_i32_15 = arith.constant 0 : i32
    %29 = arith.cmpi sgt, %arg1, %c0_i32_15 : i32
    %30 = vector.broadcast %29 : i1 to vector<10x1x1xi1>
    %31 = arith.ori %28, %30 : vector<10x1x1xi1>
    %c9_i32 = arith.constant 9 : i32
    %32 = vector.broadcast %c9_i32 : i32 to vector<10x1x1xi32>
    %33 = arith.cmpi ne, %26, %32 : vector<10x1x1xi32>
    %c1_i32_16 = arith.constant 1 : i32
    %34 = arith.cmpi slt, %arg1, %c1_i32_16 : i32
    %35 = vector.broadcast %34 : i1 to vector<10x1x1xi1>
    %36 = arith.ori %33, %35 : vector<10x1x1xi1>
    %37 = arith.andi %31, %36 : vector<10x1x1xi1>
    %cst_17 = arith.constant 0.000000e+00 : f32
    %38 = vector.shape_cast %37 : vector<10x1x1xi1> to vector<10x1x1xi1>
    %39 = vector.broadcast %38 : vector<10x1x1xi1> to vector<10x16x4xi1>
    %40 = vector.broadcast %cst_17 : f32 to vector<10x16x4xf32>
    %41 = arith.select %39, %25, %40 : vector<10x16x4xi1>, vector<10x16x4xf32>
    %cst_18 = arith.constant 0.000000e+00 : f32
    %42 = vector.broadcast %cst_18 : f32 to vector<10x1x4xf32>
    %43 = tpu.concatenate %42, %41, %42 in 1 : vector<10x1x4xf32>, vector<10x16x4xf32>, vector<10x1x4xf32> -> vector<10x18x4xf32>
    %44 = arith.truncf %43 : vector<10x18x4xf32> to vector<10x18x4xbf16>
    %c0_19 = arith.constant 0 : index
    %c0_20 = arith.constant 0 : index
    %c0_21 = arith.constant 0 : index
    %45 = vector.load %arg10[%c0_19, %c0_20, %c0_21] : memref<10x18x4xbf16, #tpu.memory_space<vmem>>, vector<10x18x4xbf16>
    tpu.vector_store %arg10[%c0_19, %c0_20, %c0_21], %44 {strides = array<i32>} : memref<10x18x4xbf16, #tpu.memory_space<vmem>>, vector<10x18x4xbf16>,
    %cst_22 = arith.constant 0.000000e+00 : f32
    %46 = vector.broadcast %cst_22 : f32 to vector<128x4xf32>
    %c0_23 = arith.constant 0 : index
    %c0_24 = arith.constant 0 : index
    %47 = vector.load %arg8[%c0_23, %c0_24] : memref<1x4xf32, #tpu.memory_space<vmem>>, vector<1x4xf32>
    %48 = vector.broadcast %47 : vector<1x4xf32> to vector<128x4xf32>
    %49 = arith.addf %46, %48 : vector<128x4xf32>
    %c0_25 = arith.constant 0 : index
    %c0_26 = arith.constant 0 : index
    %c0_27 = arith.constant 0 : index
    %50 = vector.load %arg10[%c0_25, %c0_26, %c0_27] : memref<10x18x4xbf16, #tpu.memory_space<vmem>>, vector<8x16x4xbf16>
    %51 = vector.shape_cast %50 : vector<8x16x4xbf16> to vector<128x4xbf16>
    %c0_28 = arith.constant 0 : index
    %c0_29 = arith.constant 0 : index
    %c0_30 = arith.constant 0 : index
    %52 = vector.load %arg7[%c0_28, %c0_29, %c0_30] : memref<9x4x4xbf16, #tpu.memory_space<vmem>>, vector<1x4x4xbf16>
    %53 = vector.shape_cast %52 : vector<1x4x4xbf16> to vector<4x4xbf16>
    %cst_31 = arith.constant dense<0.000000e+00> : vector<128x4xf32>
    %54 = tpu.matmul %51, %53, %cst_31 {dimension_numbers = #tpu.dot_dimension_numbers<[1], [0], [0], [1], [0, 0, 1, 1], [], []>} : vector<128x4xbf16>, vector<4x4xbf16>, vector<128x4xf32> -> vector<128x4xf32>
    %55 = arith.addf %49, %54 : vector<128x4xf32>
    %c0_32 = arith.constant 0 : index
    %c1 = arith.constant 1 : index
    %c0_33 = arith.constant 0 : index
    %56 = vector.load %arg10[%c0_32, %c1, %c0_33] : memref<10x18x4xbf16, #tpu.memory_space<vmem>>, vector<8x16x4xbf16>
    %57 = vector.shape_cast %56 : vector<8x16x4xbf16> to vector<128x4xbf16>
    %c1_34 = arith.constant 1 : index
    %c0_35 = arith.constant 0 : index
    %c0_36 = arith.constant 0 : index
    %58 = vector.load %arg7[%c1_34, %c0_35, %c0_36] : memref<9x4x4xbf16, #tpu.memory_space<vmem>>, vector<1x4x4xbf16>
    %59 = vector.shape_cast %58 : vector<1x4x4xbf16> to vector<4x4xbf16>
    %cst_37 = arith.constant dense<0.000000e+00> : vector<128x4xf32>
    %60 = tpu.matmul %57, %59, %cst_37 {dimension_numbers = #tpu.dot_dimension_numbers<[1], [0], [0], [1], [0, 0, 1, 1], [], []>} : vector<128x4xbf16>, vector<4x4xbf16>, vector<128x4xf32> -> vector<128x4xf32>
    %61 = arith.addf %55, %60 : vector<128x4xf32>
    %c0_38 = arith.constant 0 : index
    %c2 = arith.constant 2 : index
    %c0_39 = arith.constant 0 : index
    %62 = vector.load %arg10[%c0_38, %c2, %c0_39] : memref<10x18x4xbf16, #tpu.memory_space<vmem>>, vector<8x16x4xbf16>
    %63 = vector.shape_cast %62 : vector<8x16x4xbf16> to vector<128x4xbf16>
    %c2_40 = arith.constant 2 : index
    %c0_41 = arith.constant 0 : index
    %c0_42 = arith.constant 0 : index
    %64 = vector.load %arg7[%c2_40, %c0_41, %c0_42] : memref<9x4x4xbf16, #tpu.memory_space<vmem>>, vector<1x4x4xbf16>
    %65 = vector.shape_cast %64 : vector<1x4x4xbf16> to vector<4x4xbf16>
    %cst_43 = arith.constant dense<0.000000e+00> : vector<128x4xf32>
    %66 = tpu.matmul %63, %65, %cst_43 {dimension_numbers = #tpu.dot_dimension_numbers<[1], [0], [0], [1], [0, 0, 1, 1], [], []>} : vector<128x4xbf16>, vector<4x4xbf16>, vector<128x4xf32> -> vector<128x4xf32>
    %67 = arith.addf %61, %66 : vector<128x4xf32>
    %c1_44 = arith.constant 1 : index
    %c0_45 = arith.constant 0 : index
    %c0_46 = arith.constant 0 : index
    %68 = vector.load %arg10[%c1_44, %c0_45, %c0_46] : memref<10x18x4xbf16, #tpu.memory_space<vmem>>, vector<8x16x4xbf16>
    %69 = vector.shape_cast %68 : vector<8x16x4xbf16> to vector<128x4xbf16>
    %c3 = arith.constant 3 : index
    %c0_47 = arith.constant 0 : index
    %c0_48 = arith.constant 0 : index
    %70 = vector.load %arg7[%c3, %c0_47, %c0_48] : memref<9x4x4xbf16, #tpu.memory_space<vmem>>, vector<1x4x4xbf16>
    %71 = vector.shape_cast %70 : vector<1x4x4xbf16> to vector<4x4xbf16>
    %cst_49 = arith.constant dense<0.000000e+00> : vector<128x4xf32>
    %72 = tpu.matmul %69, %71, %cst_49 {dimension_numbers = #tpu.dot_dimension_numbers<[1], [0], [0], [1], [0, 0, 1, 1], [], []>} : vector<128x4xbf16>, vector<4x4xbf16>, vector<128x4xf32> -> vector<128x4xf32>
    %73 = arith.addf %67, %72 : vector<128x4xf32>
    %c1_50 = arith.constant 1 : index
    %c1_51 = arith.constant 1 : index
    %c0_52 = arith.constant 0 : index
    %74 = vector.load %arg10[%c1_50, %c1_51, %c0_52] : memref<10x18x4xbf16, #tpu.memory_space<vmem>>, vector<8x16x4xbf16>
    %75 = vector.shape_cast %74 : vector<8x16x4xbf16> to vector<128x4xbf16>
    %c4 = arith.constant 4 : index
    %c0_53 = arith.constant 0 : index
    %c0_54 = arith.constant 0 : index
    %76 = vector.load %arg7[%c4, %c0_53, %c0_54] : memref<9x4x4xbf16, #tpu.memory_space<vmem>>, vector<1x4x4xbf16>
    %77 = vector.shape_cast %76 : vector<1x4x4xbf16> to vector<4x4xbf16>
    %cst_55 = arith.constant dense<0.000000e+00> : vector<128x4xf32>
    %78 = tpu.matmul %75, %77, %cst_55 {dimension_numbers = #tpu.dot_dimension_numbers<[1], [0], [0], [1], [0, 0, 1, 1], [], []>} : vector<128x4xbf16>, vector<4x4xbf16>, vector<128x4xf32> -> vector<128x4xf32>
    %79 = arith.addf %73, %78 : vector<128x4xf32>
    %c1_56 = arith.constant 1 : index
    %c2_57 = arith.constant 2 : index
    %c0_58 = arith.constant 0 : index
    %80 = vector.load %arg10[%c1_56, %c2_57, %c0_58] : memref<10x18x4xbf16, #tpu.memory_space<vmem>>, vector<8x16x4xbf16>
    %81 = vector.shape_cast %80 : vector<8x16x4xbf16> to vector<128x4xbf16>
    %c5 = arith.constant 5 : index
    %c0_59 = arith.constant 0 : index
    %c0_60 = arith.constant 0 : index
    %82 = vector.load %arg7[%c5, %c0_59, %c0_60] : memref<9x4x4xbf16, #tpu.memory_space<vmem>>, vector<1x4x4xbf16>
    %83 = vector.shape_cast %82 : vector<1x4x4xbf16> to vector<4x4xbf16>
    %cst_61 = arith.constant dense<0.000000e+00> : vector<128x4xf32>
    %84 = tpu.matmul %81, %83, %cst_61 {dimension_numbers = #tpu.dot_dimension_numbers<[1], [0], [0], [1], [0, 0, 1, 1], [], []>} : vector<128x4xbf16>, vector<4x4xbf16>, vector<128x4xf32> -> vector<128x4xf32>
    %85 = arith.addf %79, %84 : vector<128x4xf32>
    %c2_62 = arith.constant 2 : index
    %c0_63 = arith.constant 0 : index
    %c0_64 = arith.constant 0 : index
    %86 = vector.load %arg10[%c2_62, %c0_63, %c0_64] : memref<10x18x4xbf16, #tpu.memory_space<vmem>>, vector<8x16x4xbf16>
    %87 = vector.shape_cast %86 : vector<8x16x4xbf16> to vector<128x4xbf16>
    %c6 = arith.constant 6 : index
    %c0_65 = arith.constant 0 : index
    %c0_66 = arith.constant 0 : index
    %88 = vector.load %arg7[%c6, %c0_65, %c0_66] : memref<9x4x4xbf16, #tpu.memory_space<vmem>>, vector<1x4x4xbf16>
    %89 = vector.shape_cast %88 : vector<1x4x4xbf16> to vector<4x4xbf16>
    %cst_67 = arith.constant dense<0.000000e+00> : vector<128x4xf32>
    %90 = tpu.matmul %87, %89, %cst_67 {dimension_numbers = #tpu.dot_dimension_numbers<[1], [0], [0], [1], [0, 0, 1, 1], [], []>} : vector<128x4xbf16>, vector<4x4xbf16>, vector<128x4xf32> -> vector<128x4xf32>
    %91 = arith.addf %85, %90 : vector<128x4xf32>
    %c2_68 = arith.constant 2 : index
    %c1_69 = arith.constant 1 : index
    %c0_70 = arith.constant 0 : index
    %92 = vector.load %arg10[%c2_68, %c1_69, %c0_70] : memref<10x18x4xbf16, #tpu.memory_space<vmem>>, vector<8x16x4xbf16>
    %93 = vector.shape_cast %92 : vector<8x16x4xbf16> to vector<128x4xbf16>
    %c7 = arith.constant 7 : index
    %c0_71 = arith.constant 0 : index
    %c0_72 = arith.constant 0 : index
    %94 = vector.load %arg7[%c7, %c0_71, %c0_72] : memref<9x4x4xbf16, #tpu.memory_space<vmem>>, vector<1x4x4xbf16>
    %95 = vector.shape_cast %94 : vector<1x4x4xbf16> to vector<4x4xbf16>
    %cst_73 = arith.constant dense<0.000000e+00> : vector<128x4xf32>
    %96 = tpu.matmul %93, %95, %cst_73 {dimension_numbers = #tpu.dot_dimension_numbers<[1], [0], [0], [1], [0, 0, 1, 1], [], []>} : vector<128x4xbf16>, vector<4x4xbf16>, vector<128x4xf32> -> vector<128x4xf32>
    %97 = arith.addf %91, %96 : vector<128x4xf32>
    %c2_74 = arith.constant 2 : index
    %c2_75 = arith.constant 2 : index
    %c0_76 = arith.constant 0 : index
    %98 = vector.load %arg10[%c2_74, %c2_75, %c0_76] : memref<10x18x4xbf16, #tpu.memory_space<vmem>>, vector<8x16x4xbf16>
    %99 = vector.shape_cast %98 : vector<8x16x4xbf16> to vector<128x4xbf16>
    %c8 = arith.constant 8 : index
    %c0_77 = arith.constant 0 : index
    %c0_78 = arith.constant 0 : index
    %100 = vector.load %arg7[%c8, %c0_77, %c0_78] : memref<9x4x4xbf16, #tpu.memory_space<vmem>>, vector<1x4x4xbf16>
    %101 = vector.shape_cast %100 : vector<1x4x4xbf16> to vector<4x4xbf16>
    %cst_79 = arith.constant dense<0.000000e+00> : vector<128x4xf32>
    %102 = tpu.matmul %99, %101, %cst_79 {dimension_numbers = #tpu.dot_dimension_numbers<[1], [0], [0], [1], [0, 0, 1, 1], [], []>} : vector<128x4xbf16>, vector<4x4xbf16>, vector<128x4xf32> -> vector<128x4xf32>
    %103 = arith.addf %97, %102 : vector<128x4xf32>
    %cst_80 = arith.constant 0.000000e+00 : f32
    %104 = vector.broadcast %cst_80 : f32 to vector<128x4xf32>
    %105 = arith.maximumf %103, %104 : vector<128x4xf32>
    %c1_81 = arith.constant 1 : index
    %c1_82 = arith.constant 1 : index
    %c0_83 = arith.constant 0 : index
    %106 = vector.load %arg10[%c1_81, %c1_82, %c0_83] : memref<10x18x4xbf16, #tpu.memory_space<vmem>>, vector<8x16x4xbf16>
    %107 = vector.shape_cast %106 : vector<8x16x4xbf16> to vector<128x4xbf16>
    %c0_84 = arith.constant 0 : index
    %c0_85 = arith.constant 0 : index
    %108 = vector.load %arg5[%c0_84, %c0_85] : memref<4x4xbf16, #tpu.memory_space<vmem>>, vector<4x4xbf16>
    %cst_86 = arith.constant dense<0.000000e+00> : vector<128x4xf32>
    %109 = tpu.matmul %107, %108, %cst_86 {dimension_numbers = #tpu.dot_dimension_numbers<[1], [0], [0], [1], [0, 0, 1, 1], [], []>} : vector<128x4xbf16>, vector<4x4xbf16>, vector<128x4xf32> -> vector<128x4xf32>
    %c0_87 = arith.constant 0 : index
    %c0_88 = arith.constant 0 : index
    %110 = vector.load %arg6[%c0_87, %c0_88] : memref<1x4xf32, #tpu.memory_space<vmem>>, vector<1x4xf32>
    %111 = vector.broadcast %110 : vector<1x4xf32> to vector<128x4xf32>
    %112 = arith.addf %109, %111 : vector<128x4xf32>
    %cst_89 = arith.constant 0.000000e+00 : f32
    %113 = vector.broadcast %cst_89 : f32 to vector<128x4xf32>
    %114 = arith.maximumf %112, %113 : vector<128x4xf32>
    %115 = tpu.concatenate %114, %105 in 1 : vector<128x4xf32>, vector<128x4xf32> -> vector<128x8xf32>
    %116 = vector.shape_cast %115 : vector<128x8xf32> to vector<1x8x16x8xf32>
    %c0_90 = arith.constant 0 : index
    %c0_91 = arith.constant 0 : index
    %c0_92 = arith.constant 0 : index
    %c0_93 = arith.constant 0 : index
    %117 = vector.load %arg9[%c0_90, %c0_91, %c0_92, %c0_93] : memref<1x8x16x8xf32, #tpu.memory_space<vmem>>, vector<1x8x16x8xf32>
    tpu.vector_store %arg9[%c0_90, %c0_91, %c0_92, %c0_93], %116 {strides = array<i32>} : memref<1x8x16x8xf32, #tpu.memory_space<vmem>>, vector<1x8x16x8xf32>,
    return
  }
  func.func @transform_0(%arg0: i32, %arg1: i32) -> (i32, i32, i32, i32) {
    %c0_i32 = arith.constant 0 : i32
    %c0_i32_0 = arith.constant 0 : i32
    %c0_i32_1 = arith.constant 0 : i32
    %c0_i32_2 = arith.constant 0 : i32
    return %arg0, %c0_i32, %c0_i32_0, %c0_i32_1 : i32, i32, i32, i32
  }
  func.func @transform_1(%arg0: i32, %arg1: i32) -> (i32, i32) {
    %c0_i32 = arith.constant 0 : i32
    %c0_i32_0 = arith.constant 0 : i32
    %c0_i32_1 = arith.constant 0 : i32
    return %c0_i32, %c0_i32_0 : i32, i32
  }
  func.func @transform_2(%arg0: i32, %arg1: i32) -> (i32, i32) {
    %c0_i32 = arith.constant 0 : i32
    %c0_i32_0 = arith.constant 0 : i32
    %c0_i32_1 = arith.constant 0 : i32
    return %c0_i32, %c0_i32_0 : i32, i32
  }
  func.func @transform_3(%arg0: i32, %arg1: i32) -> (i32, i32) {
    %c0_i32 = arith.constant 0 : i32
    %c0_i32_0 = arith.constant 0 : i32
    %c0_i32_1 = arith.constant 0 : i32
    return %c0_i32, %c0_i32_0 : i32, i32
  }
  func.func @transform_4(%arg0: i32, %arg1: i32) -> (i32, i32) {
    %c0_i32 = arith.constant 0 : i32
    %c0_i32_0 = arith.constant 0 : i32
    %c0_i32_1 = arith.constant 0 : i32
    return %c0_i32, %c0_i32_0 : i32, i32
  }
  func.func @transform_5(%arg0: i32, %arg1: i32) -> (i32, i32, i32) {
    %c0_i32 = arith.constant 0 : i32
    %c0_i32_0 = arith.constant 0 : i32
    %c0_i32_1 = arith.constant 0 : i32
    %c0_i32_2 = arith.constant 0 : i32
    return %c0_i32, %c0_i32_0, %c0_i32_1 : i32, i32, i32
  }
  func.func @transform_6(%arg0: i32, %arg1: i32) -> (i32, i32) {
    %c0_i32 = arith.constant 0 : i32
    %c0_i32_0 = arith.constant 0 : i32
    %c0_i32_1 = arith.constant 0 : i32
    return %c0_i32, %c0_i32_0 : i32, i32
  }
  func.func @transform_7(%arg0: i32, %arg1: i32) -> (i32, i32, i32, i32) {
    %c0_i32 = arith.constant 0 : i32
    %c0_i32_0 = arith.constant 0 : i32
    %c0_i32_1 = arith.constant 0 : i32
    return %arg0, %arg1, %c0_i32, %c0_i32_0 : i32, i32, i32, i32
  }
}

</mosaic_0001>

<bundles_post_ra>
// kernel: fire_forward.1
= control target key start
LH: loop header
LB: loop body
LE: loop exit
PB: predicated region body
PF: predicated region fallthrough
CT: control target
= control target key end

     0   :  { %s4410_s24 = smov 0   ;;  %s4412_s25 = smov 0   ;;  %s5764_s0 = inlined_call_operand.vmem [shape: f32[2,16,16,8], index: 0, kind: input, shape index: {}]   ;;  %s5765_s1 = inlined_call_operand.vmem [shape: bf16[8,4], index: 1, kind: input, shape index: {}]   ;;  %s5766_s2 = inlined_call_operand.vmem [shape: f32[1,4], index: 2, kind: input, shape index: {}]   ;;  %s5767_s3 = inlined_call_operand.vmem [shape: bf16[4,4], index: 3, kind: input, shape index: {}]   ;;  %s5768_s4 = inlined_call_operand.vmem [shape: f32[1,4], index: 4, kind: input, shape index: {}]   ;;  %s5769_s5 = inlined_call_operand.vmem [shape: bf16[9,4,4], index: 5, kind: input, shape index: {}]   ;;  %s5770_s6 = inlined_call_operand.vmem [shape: f32[1,4], index: 6, kind: input, shape index: {}]   ;;  %s5771_s7 = inlined_call_operand.vmem [shape: f32[2,16,16,8], index: 7, kind: output, shape index: {}]  }
   0x1   :  { %s4414_s26 = smov 0   ;;  %s4416_s27 = smov 0  }
   0x2   :  { %s4418_s28 = smov 0  }
   0x3 LB: > { %s26_s29 = sadd.s32 1, %s4359_s26  ;;  %s29_s30 = sadd.s32 1, %s4363_s27  ;;  %s4367_s28 = sphi %s4418_s28, %s17_s28   ;;  %s4363_s27 = sphi %s4416_s27, %s5848_s27   ;;  %s4359_s26 = sphi %s4414_s26, %s5847_s26   ;;  %s4355_s25 = sphi %s4412_s25, %s5846_s25   ;;  %s4351_s24 = sphi %s4410_s24, %s5845_s24  }
   0x4   : > { %p27_p0 = scmp.ge.s32.totalorder %s26_s29, 2  ;;  %p3674_p1 = scmp.ge.s32.totalorder %s4367_s28, 1 }
   0x5   : > { %p251_p2 = scmp.lt.s32.totalorder %s4367_s28, 5 }
   0x6   : > { %s5850_s29 = smov (%p27_p0, %s26_s29), 0  ;;  %s5852_s30 = smov (!%p27_p0, %s29_s30), %s4363_s27 }
   0x7   : > { %p252_p3 = pnand %p3674_p1, %p251_p2  ;;  %p31_p4 = scmp.ge.s32.totalorder %s5852_s30, 2 }
   0x9   : > { %s5854_s30 = smov (%p31_p4, %s5852_s30), 0  ;;  %255 = sbr.rel (%p252_p3) target bundleno = 758 (0x2f6), region = 48 }
   0xe   : > { %v348_v0 = vld [vmem:[%s5765_s1] sm:$0xf]  ;;  %vm387_vm0 = vcmask 1043456   ;;  %p288_p5 = scmp.lt.s32.totalorder %s4355_s25, 1  ;;  %s4446_s10 = sshll.u32 %s4351_s24, 3  ;;  %vm356_vm1 = vcmask 64512  }
   0xf   : > { %4252 = vmatprep.subr.msk.bf16.mxu0 %vm387_vm0, %v348_v0  ;;  %v389_v1 = vsel %vm387_vm0, %v348_v0, 0  ;;  %p296_p6 = scmp.lt.s32.totalorder %s4446_s10, 15  ;;  %s3682_s11 = sadd.s32 4294967295, %s4446_s10  ;;  %v843_v32 = vld [vmem:[%s5769_s5] sm:$0x3]  ;;  %vm909_vm2 = vcmask 1041408  }
  0x10   : > { %4049 = vmatpush3.bf16.msra.mxu0 %v389_v1  ;;  %s5856_s25 = smov (!%p288_p5, %s4355_s25), 1  ;;  %p307_p7 = scmp.gt.s32.totalorder %s3682_s11, 0  ;;  %v911_v33 = vsel %vm909_vm2, %v843_v32, 0  ;;  %4254 = vmatprep.subr.msk.bf16.mxu1 %vm909_vm2, %v843_v32  ;;  %v3769_v34 = vld [vmem:[%s5769_s5 + $0x4] sm:$0x3]  ;;  %vm576_vm3 = vcmask 1040384  }
  0x11   : > { %s297_s12 = scalar_select %p296_p6, %s4446_s10, 15  ;;  %4253 = vmatprep.subr.msk.bf16.mxu0 %vm909_vm2, %v843_v32  ;;  %4251 = vmatpush3.bf16.msra.mxu1 %v911_v33  ;;  %v3744_v35 = vld [vmem:[%s5769_s5 + $0x2] sm:$0x3]  ;;  %v4509_v36 = vld [vmem:[%s5766_s2] ss:$0 sm:$0xff]  ;;  %vm787_vm5 = vcmask 27648  }
  0x12   : > { %s3679_s13 = sshll.u32 %s5856_s25, 5  ;;  %s3915_s14 = sshll.u32 %s5856_s25, 8  ;;  %4255 = vmatprep.subr.msk.bf16.mxu1 %vm909_vm2, %v3744_v35  ;;  %vm790_vm6 = vcmask 24576   ;;  %vm884_vm7 = vcmask 31744   ;;  %vm1443_vm8 = vcmask 1042432   ;;  %vm1444_vm9 = vcmask 1046532  }
  0x13   : > { %s3678_s15 = sshll.u32 %s297_s12, 1  ;;  %s4456_s19 = scalar_lea.vmem %s5764_s0, %s3915_s14  ;;  %vm4614_vm10 = vmor %vm1443_vm8, %vm1444_vm9  ;;  %vm1050_vm11 = vsmask.f32 3328  ;;  %vm1051_vm12 = vsmask.f32 7440 }
  0x14   : > { %s4451_s16 = sadd.s32 %s3679_s13, %s3678_s15  ;;  %s5858_s11 = smov (!%p307_p7, %s3682_s11), 0  ;;  %vm4740_vm14 = vmor %vm1050_vm11, %vm1051_vm12 }
  0x15   : > { %s3683_s20 = sshll.u32 %s5858_s11, 4  ;;  %s3916_s21 = sshll.u32 %s4351_s24, 7 }
  0x16   : > { %s313_s22 = scalar_lea.vmem %s4456_s19, %s3683_s20  ;;  %s4461_s23 = scalar_lea.vmem %s4456_s19, %s3916_s21 }
  0x17   : > { %v314_v2 = vld [vmem:[%s313_s22] sm:$0xff]  ;;  %v315_v3 = vld [vmem:[%s313_s22 + $0x8] sm:$0xff]  ;;  %v320_v7 = vld [vmem:[%s4461_s23 + $0x10] sm:$0xff]  ;;  %s309_s25 = sadd.s32 8, %s4446_s10  ;;  %p524_p9 = scmp.gt.s32.totalorder %s4351_s24, 0 }
  0x18   : > { %v318_v4 = vld [vmem:[%s4461_s23] sm:$0xff]  ;;  %v338_v5 = vpack.c.bf16 %v315_v3, %v314_v2  ;;  %v319_v6 = vld [vmem:[%s4461_s23 + $0x8] sm:$0xff]  ;;  %v321_v8 = vld [vmem:[%s4461_s23 + $0x18] sm:$0xff]  ;;  %p310_p8 = scmp.lt.s32.totalorder %s309_s25, 15  ;;  %p528_p10 = scmp.lt.s32.totalorder %s4351_s24, 1 }
  0x19   : > { %v339_v9 = vpack.c.bf16 %v319_v6, %v318_v4  ;;  %v340_v10 = vpack.c.bf16 %v321_v8, %v320_v7  ;;  %v322_v11 = vld [vmem:[%s4461_s23 + $0x20] sm:$0xff]  ;;  %v323_v12 = vld [vmem:[%s4461_s23 + $0x28] sm:$0xff]  ;;  %v324_v13 = vld [vmem:[%s4461_s23 + $0x30] sm:$0xff]  ;;  %s525_s17 = scalar_select %p524_p9, 1, 0  ;;  %v4533_v8 = vsel %vm909_vm2, %v3769_v34, 0 }
  0x1a   : > { %4050 = vmatprep.mubr.msk.bf16.mxu0 %vm356_vm1, %v338_v5  ;;  %v325_v14 = vld [vmem:[%s4461_s23 + $0x38] sm:$0xff]  ;;  %v341_v15 = vpack.c.bf16 %v323_v12, %v322_v11  ;;  %v326_v17 = vld [vmem:[%s4461_s23 + $0x40] sm:$0xff]  ;;  %v327_v18 = vld [vmem:[%s4461_s23 + $0x48] sm:$0xff]  ;;  %s5860_s25 = smov (!%p310_p8, %s309_s25), 15  ;;  %s4369_s20 = smov 4  }
  0x1b   : > { %4051 = vmatmul.mubr.msk.bf16.vlgmr.msra.gmra.mxu0 %vm356_vm1, %v339_v9  ;;  %v342_v16 = vpack.c.bf16 %v325_v14, %v324_v13  ;;  %v328_v19 = vld [vmem:[%s4461_s23 + $0x50] sm:$0xff]  ;;  %v329_v20 = vld [vmem:[%s4461_s23 + $0x58] sm:$0xff]  ;;  %v343_v21 = vpack.c.bf16 %v327_v18, %v326_v17  ;;  %v330_v23 = vld [vmem:[%s4461_s23 + $0x60] sm:$0xff]  ;;  %s3685_s8 = sshll.u32 %s5860_s25, 4  ;;  %v526_v39 = vstv %s525_s17 }
  0x1c   : > { %4054 = vmatprep.mubr.msk.bf16.mxu0 %vm356_vm1, %v340_v10  ;;  %v344_v22 = vpack.c.bf16 %v329_v20, %v328_v19  ;;  %v331_v24 = vld [vmem:[%s4461_s23 + $0x68] sm:$0xff]  ;;  %v332_v25 = vld [vmem:[%s4461_s23 + $0x70] sm:$0xff]  ;;  %v333_v26 = vld [vmem:[%s4461_s23 + $0x78] sm:$0xff]  ;;  %s335_s9 = scalar_lea.vmem %s4456_s19, %s3685_s8  ;;  %4071 = vmatpush3.bf16.msra.mxu0 %v911_v33  ;;  %vm4513_vm4 = vcmp.eq.s32.totalorder %v526_v39, 1  ;;  %s3680_s23 = sshll.u32 %s4451_s16, 3 }
  0x1d   : > { %v345_v27 = vpack.c.bf16 %v331_v24, %v330_v23  ;;  %v346_v28 = vpack.c.bf16 %v333_v26, %v332_v25  ;;  %v336_v29 = vld [vmem:[%s335_s9] sm:$0xff]  ;;  %v337_v30 = vld [vmem:[%s335_s9 + $0x8] sm:$0xff]  ;;  %4256 = vmatprep.subr.msk.bf16.mxu0 %vm909_vm2, %v3769_v34  ;;  %s4573_s9 = scalar_select %p528_p10, 1, 0 }
  0x1e   : > { %v347_v31 = vpack.c.bf16 %v337_v30, %v336_v29  ;;  %v4539_v9 = vld [vmem:[%s5769_s5 + $0x6] sm:$0x3]  ;;  %v4544_v10 = vld [vmem:[%s5769_s5 + $0x8] sm:$0x3]  ;;  %v4556_v20 = vld [vmem:[%s5769_s5 + $0xc] sm:$0x3] }
  0x1f   : > { %v4562_v24 = vsel %vm909_vm2, %v4539_v9, 0  ;;  %v4566_v25 = vsel %vm909_vm2, %v4544_v10, 0  ;;  %v4581_v34 = vsel %vm909_vm2, %v4556_v20, 0 }
  0x23   : > { %4055 = vmatmul.mubr.msk.bf16.gmra.mxu0 %vm356_vm1, %v341_v15  ;;  %v4551_v15 = vsel %vm909_vm2, %v3744_v35, 0 }
  0x24   : > { %4058 = vmatprep.mubr.msk.bf16.mxu0 %vm356_vm1, %v342_v16 }
  0x2b   : > { %4059 = vmatmul.mubr.msk.bf16.gmra.mxu0 %vm356_vm1, %v343_v21 }
  0x2c   : > { %4062 = vmatprep.mubr.msk.bf16.mxu0 %vm356_vm1, %v344_v22 }
  0x33   : > { %4063 = vmatmul.mubr.msk.bf16.gmra.mxu0 %vm356_vm1, %v345_v27 }
  0x34   : > { %4066 = vmatprep.mubr.msk.bf16.mxu0 %vm356_vm1, %v346_v28 }
  0x3b   : > { %4067 = vmatmul.mubr.msk.bf16.gmra.mxu0 %vm356_vm1, %v347_v31 }
  0xdb   : > { %v4052_v37 = vpop.f32.mrf.mxu0 }
  0xdc   : > { %v434_v38 = vadd.f32 %v4052_v37, %v4509_v36 }
  0xdd   : > { %v425_v40 = vpop.f32.mrf.mxu0 }
  0xde   : > { %v506_v41 = vmax.f32 %v434_v38, 0.0  ;;  %v426_v42 = vadd.f32 %v4509_v36, %v425_v40 }
  0xdf   : > { %v4053_v44 = vpop.f32.mrf.mxu0 }
  0xe0   : > { %v580_v45 = vrot.slane %v506_v41, 7  ;;  %v504_v46 = vmax.f32 %v426_v42, 0.0  ;;  %v437_v47 = vadd.f32 %v4053_v44, %v4509_v36 }
  0xe1   : > { %v428_v48 = vpop.f32.mrf.mxu0 }
  0xe2   : > { %v638_v49 = vsel %vm576_vm3, 0.0, %v580_v45  ;;  %v536_v50 = vsel %vm4513_vm4, %v504_v46, 0.0  ;;  %v507_v51 = vmax.f32 %v437_v47, 0.0  ;;  %v429_v52 = vadd.f32 %v4509_v36, %v428_v48 }
  0xe3   : > { %v3920_v53 = vpack.c.bf16 %v638_v49, %v638_v49  ;;  %v577_v54 = vrot.slane %v536_v50, 7  ;;  %v4056_v55 = vpop.f32.mrf.mxu0 }
  0xe4   : > { %v581_v56 = vrot.slane %v507_v51, 7  ;;  %v505_v57 = vmax.f32 %v429_v52, 0.0  ;;  %v450_v58 = vadd.f32 %v4056_v55, %v4509_v36 }
  0xe5   : > { %792 = vst.msk [vmem:[#allocation2 + $0xc] sm:$0xf] %vm787_vm5, %v3920_v53  ;;  %v637_v59 = vsel %vm576_vm3, 0.0, %v577_v54  ;;  %v441_v60 = vpop.f32.mrf.mxu0 }
  0xe6   : > { %v3917_v61 = vpack.c.bf16 %v637_v59, %v637_v59  ;;  %v582_v62 = vsel %vm576_vm3, %v580_v45, %v581_v56  ;;  %v648_v63 = vsel %vm576_vm3, %v581_v56, 0.0  ;;  %v537_v0 = vsel %vm4513_vm4, %v505_v57, 0.0 }
  0xe7   : > { %v3921_v1 = vpack.c.bf16 %v582_v62, %v582_v62  ;;  %v3922_v2 = vpack.c.bf16 %v648_v63, %v648_v63  ;;  %v578_v3 = vrot.slane %v537_v0, 7  ;;  %v510_v4 = vmax.f32 %v450_v58, 0.0  ;;  %v4057_v5 = vpop.f32.mrf.mxu0 }
  0xe8   : > { %788 = vst.msk [vmem:[#allocation2] sm:$0xf] %vm787_vm5, %v3917_v61  ;;  %v442_v6 = vadd.f32 %v4509_v36, %v441_v60  ;;  %v453_v7 = vadd.f32 %v4057_v5, %v4509_v36 }
  0xe9   : > { %793 = vst.msk [vmem:[#allocation2 + $0x10] sm:$0xf] %vm787_vm5, %v3921_v1  ;;  %v579_v11 = vsel %vm576_vm3, %v577_v54, %v578_v3  ;;  %v647_v12 = vsel %vm576_vm3, %v578_v3, 0.0  ;;  %v586_v13 = vrot.slane %v510_v4, 7  ;;  %v444_v14 = vpop.f32.mrf.mxu0 }
  0xea   : > { %794 = vst.msk [vmem:[#allocation2 + $0x14] sm:$0x1] %vm790_vm6, %v3922_v2  ;;  %v3918_v16 = vpack.c.bf16 %v579_v11, %v579_v11  ;;  %v3919_v17 = vpack.c.bf16 %v647_v12, %v647_v12  ;;  %v508_v18 = vmax.f32 %v442_v6, 0.0  ;;  %v511_v19 = vmax.f32 %v453_v7, 0.0 }
  0xeb   : > { %v640_v21 = vsel %vm576_vm3, 0.0, %v586_v13  ;;  %v445_v22 = vadd.f32 %v4509_v36, %v444_v14  ;;  %v4060_v23 = vpop.f32.mrf.mxu0  ;;  %v530_v2 = vstv %s4573_s9  ;;  %s5685_s9 = scalar_lea.vmem %s5771_s7, %s3680_s23 }
  0xec   : > { %789 = vst.msk [vmem:[#allocation2 + $0x4] sm:$0xf] %vm787_vm5, %v3918_v16  ;;  %v3926_v26 = vpack.c.bf16 %v640_v21, %v640_v21  ;;  %v583_v27 = vrot.slane %v508_v18, 7  ;;  %v587_v28 = vrot.slane %v511_v19, 7  ;;  %v466_v29 = vadd.f32 %v4060_v23, %v4509_v36  ;;  %v4575_v32 = vld [vmem:[#allocation2 + $0xc] sm:$0xe] }
  0xed   : > { %791 = vst.msk [vmem:[#allocation2 + $0x8] sm:$0x1] %vm790_vm6, %v3919_v17  ;;  %v509_v30 = vmax.f32 %v445_v22, 0.0  ;;  %v457_v31 = vpop.f32.mrf.mxu0  ;;  %v4577_v33 = vld [vmem:[#allocation2 + $0xc] sm:$0xf]  ;;  %v3762_v49 = vrot.slane %v4575_v32, 9 }
  0xee   : > { %798 = vst.msk [vmem:[#allocation2 + $0x24] sm:$0xf] %vm787_vm5, %v3926_v26  ;;  %v639_v35 = vsel %vm576_vm3, 0.0, %v583_v27  ;;  %v588_v37 = vsel %vm576_vm3, %v586_v13, %v587_v28  ;;  %v650_v38 = vsel %vm576_vm3, %v587_v28, 0.0  ;;  %v514_v39 = vmax.f32 %v466_v29, 0.0 }
  0xef   : > { %v3923_v40 = vpack.c.bf16 %v639_v35, %v639_v35  ;;  %v3927_v41 = vpack.c.bf16 %v588_v37, %v588_v37  ;;  %v3928_v42 = vpack.c.bf16 %v650_v38, %v650_v38  ;;  %v584_v43 = vrot.slane %v509_v30, 7  ;;  %v4061_v44 = vpop.f32.mrf.mxu0  ;;  %v1411_v45 = vld [vmem:[#allocation2] sm:$0xe] }
  0xf0   : > { %v592_v46 = vrot.slane %v514_v39, 7  ;;  %v458_v47 = vadd.f32 %v4509_v36, %v457_v31  ;;  %v469_v48 = vadd.f32 %v4061_v44, %v4509_v36  ;;  %v3761_v53 = vrot.slane %v1411_v45, 9  ;;  %v4595_v54 = vld [vmem:[#allocation2 + $0x10] sm:$0xf] }
  0xf1   : > { %795 = vst.msk [vmem:[#allocation2 + $0x18] sm:$0xf] %vm787_vm5, %v3923_v40  ;;  %799 = vst.msk [vmem:[#allocation2 + $0x28] sm:$0xf] %vm787_vm5, %v3927_v41  ;;  %v585_v50 = vsel %vm576_vm3, %v583_v27, %v584_v43  ;;  %v649_v51 = vsel %vm576_vm3, %v584_v43, 0.0  ;;  %v460_v52 = vpop.f32.mrf.mxu0  ;;  %v1078_v55 = vshrl.u32 %v4577_v33, 16 }
  0xf2   : > { %800 = vst.msk [vmem:[#allocation2 + $0x2c] sm:$0x1] %vm790_vm6, %v3928_v42  ;;  %v3924_v56 = vpack.c.bf16 %v585_v50, %v585_v50  ;;  %v3925_v57 = vpack.c.bf16 %v649_v51, %v649_v51  ;;  %v642_v58 = vsel %vm576_vm3, 0.0, %v592_v46  ;;  %v512_v59 = vmax.f32 %v458_v47, 0.0  ;;  %v4306_v5 = vld [vmem:[#allocation2 + $0xc] sm:$0xff]  }
  0xf3   : > { %v3932_v60 = vpack.c.bf16 %v642_v58, %v642_v58  ;;  %v515_v61 = vmax.f32 %v469_v48, 0.0  ;;  %v461_v62 = vadd.f32 %v4509_v36, %v460_v52  ;;  %v4064_v63 = vpop.f32.mrf.mxu0  ;;  %v4305_v0 = vld [vmem:[#allocation2] sm:$0xff]   ;;  %v1087_v11 = vshll.u32 %v4595_v54, 16 }
  0xf4   : > { %v4600_v1 = vld [vmem:[#allocation2 + $0x4] sm:$0xf]  ;;  %796 = vst.msk [vmem:[#allocation2 + $0x1c] sm:$0xf] %vm787_vm5, %v3924_v56  ;;  %v589_v3 = vrot.slane %v512_v59, 7  ;;  %v482_v4 = vadd.f32 %v4064_v63, %v4509_v36  ;;  %4072 = vmatprep.mubr.msk.bf16.mxu0 %vm884_vm7, %v4305_v0  ;;  %v1091_v18 = vshrl.u32 %v4595_v54, 16 }
  0xf5   : > { %797 = vst.msk [vmem:[#allocation2 + $0x20] sm:$0x1] %vm790_vm6, %v3925_v57  ;;  %v4606_v6 = vld [vmem:[#allocation2 + $0x8] sm:$0x1]  ;;  %v1448_v7 = vrot.slane %v4600_v1, 5  ;;  %v593_v12 = vrot.slane %v515_v61, 7  ;;  %v473_v14 = vpop.f32.mrf.mxu0  ;;  %4073 = vmatmul.mubr.msk.bf16.vlgmr.msra.gmra.mxu0 %vm884_vm7, %v4306_v5 }
  0xf6   : > { %804 = vst.msk [vmem:[#allocation2 + $0x3c] sm:$0xf] %vm787_vm5, %v3932_v60  ;;  %v513_v13 = vmax.f32 %v461_v62, 0.0  ;;  %v1451_v17 = vrot.slane %v4606_v6, 5  ;;  %v641_v19 = vsel %vm576_vm3, 0.0, %v589_v3  ;;  %v518_v21 = vmax.f32 %v482_v4, 0.0  ;;  %4107 = vmatpush3.bf16.msra.mxu0 %v4533_v8 }
  0xf7   : > { %v474_v22 = vadd.f32 %v4509_v36, %v473_v14  ;;  %v1449_v23 = vsel %vm4614_vm10, %v3761_v53, %v1448_v7  ;;  %v3929_v26 = vpack.c.bf16 %v641_v19, %v641_v19  ;;  %v594_v27 = vsel %vm576_vm3, %v592_v46, %v593_v12  ;;  %v4065_v30 = vpop.f32.mrf.mxu0  ;;  %4258 = vmatprep.subr.msk.bf16.mxu0 %vm909_vm2, %v4544_v10  ;;  %v1031_v10 = vld [vmem:[#allocation2 + $0x14] sm:$0x1] }
  0xf8   : > { %v652_v28 = vsel %vm576_vm3, %v593_v12, 0.0  ;;  %v590_v29 = vrot.slane %v513_v13, 7  ;;  %v3933_v31 = vpack.c.bf16 %v594_v27, %v594_v27  ;;  %v598_v37 = vrot.slane %v518_v21, 7  ;;  %v1413_v47 = vld [vmem:[#allocation2 + $0x18] sm:$0xe]  ;;  %v4308_v59 = vld [vmem:[#allocation2 + $0x24] sm:$0xff]  }
  0xf9   : > { %v3934_v35 = vpack.c.bf16 %v652_v28, %v652_v28  ;;  %v516_v38 = vmax.f32 %v474_v22, 0.0  ;;  %801 = vst.msk [vmem:[#allocation2 + $0x30] sm:$0xf] %vm787_vm5, %v3929_v26  ;;  %v485_v41 = vadd.f32 %v4065_v30, %v4509_v36  ;;  %v476_v42 = vpop.f32.mrf.mxu0  ;;  %v1450_v43 = vrot.slane %v1448_v7, 4  ;;  %v4655_v12 = vld [vmem:[#allocation2 + $0x28] sm:$0xf] }
  0xfa   : > { %v591_v39 = vsel %vm576_vm3, %v589_v3, %v590_v29  ;;  %v651_v40 = vsel %vm576_vm3, %v590_v29, 0.0  ;;  %805 = vst.msk [vmem:[#allocation2 + $0x40] sm:$0xf] %vm787_vm5, %v3933_v31  ;;  %v644_v45 = vsel %vm576_vm3, 0.0, %v598_v37  ;;  %v477_v51 = vadd.f32 %v4509_v36, %v476_v42  ;;  %v1414_v13 = vld [vmem:[#allocation2 + $0x24] sm:$0xe] }
  0xfb   : > { %806 = vst.msk [vmem:[#allocation2 + $0x44] sm:$0x1] %vm790_vm6, %v3934_v35  ;;  %v3930_v8 = vpack.c.bf16 %v591_v39, %v591_v39  ;;  %v3931_v44 = vpack.c.bf16 %v651_v40, %v651_v40  ;;  %v595_v46 = vrot.slane %v516_v38, 7  ;;  %v3938_v48 = vpack.c.bf16 %v644_v45, %v644_v45  ;;  %v4307_v53 = vld [vmem:[#allocation2 + $0x18] sm:$0xff]   ;;  %v4669_v28 = vld [vmem:[#allocation2 + $0x2c] sm:$0x1] }
  0xfc   : > { %v519_v50 = vmax.f32 %v485_v41, 0.0  ;;  %v1452_v52 = vsel %vm4614_vm10, %v1450_v43, %v1451_v17  ;;  %v4640_v56 = vld [vmem:[#allocation2 + $0x1c] sm:$0xf]  ;;  %v4645_v60 = vrot.slane %v1087_v11, 5  ;;  %v4647_v61 = vrot.slane %v1091_v18, 4  ;;  %4076 = vmatprep.mubr.msk.bf16.mxu1 %vm884_vm7, %v4307_v53 }
  0xfd   : > { %802 = vst.msk [vmem:[#allocation2 + $0x34] sm:$0xf] %vm787_vm5, %v3930_v8  ;;  %v643_v57 = vsel %vm576_vm3, 0.0, %v595_v46  ;;  %v3770_v58 = vcombine.low %v1449_v23, %v1452_v52  ;;  %810 = vst.msk [vmem:[#allocation2 + $0x54] sm:$0xf] %vm787_vm5, %v3938_v48  ;;  %v517_v0 = vmax.f32 %v477_v51, 0.0  ;;  %4077 = vmatmul.mubr.msk.bf16.vlgmr.msra.gmra.mxu1 %vm884_vm7, %v4308_v59  ;;  %v4068_v8 = vpop.f32.mrf.mxu0 }
  0xfe   : > { %803 = vst.msk [vmem:[#allocation2 + $0x38] sm:$0x1] %vm790_vm6, %v3931_v44  ;;  %v3935_v62 = vpack.c.bf16 %v643_v57, %v643_v57  ;;  %v599_v63 = vrot.slane %v519_v50, 7  ;;  %v1097_v3 = vshll.u32 %v1031_v10, 16  ;;  %v1455_v4 = vrot.slane %v4595_v54, 5  ;;  %4089 = vmatpush3.bf16.msra.mxu1 %v4551_v15 }
  0xff   : > { %4108 = vmatprep.mubr.msk.bf16.mxu0 %vm884_vm7, %v3770_v58  ;;  %v1458_v5 = vrot.slane %v1031_v10, 5  ;;  %v3763_v7 = vrot.slane %v1413_v47, 9  ;;  %v1462_v11 = vrot.slane %v4640_v56, 5  ;;  %v596_v18 = vrot.slane %v517_v0, 7  ;;  %v4663_v21 = vld [vmem:[#allocation2 + $0x20] sm:$0x1]  ;;  %4257 = vmatprep.subr.msk.bf16.mxu1 %vm909_vm2, %v4539_v9 }
 0x100   : > { %807 = vst.msk [vmem:[#allocation2 + $0x48] sm:$0xf] %vm787_vm5, %v3935_v62  ;;  %v600_v14 = vsel %vm576_vm3, %v598_v37, %v599_v63  ;;  %v654_v17 = vsel %vm576_vm3, %v599_v63, 0.0  ;;  %v4661_v19 = vrot.slane %v1097_v3, 5  ;;  %v1026_v54 = vld [vmem:[#allocation2] sm:$0xf]  ;;  %v1456_v26 = vsel %vm4614_vm10, %v3762_v49, %v1455_v4 }
 0x101   : > { %v3939_v22 = vpack.c.bf16 %v600_v14, %v600_v14  ;;  %v3940_v23 = vpack.c.bf16 %v654_v17, %v654_v17  ;;  %v1457_v27 = vrot.slane %v1455_v4, 4  ;;  %v597_v15 = vsel %vm576_vm3, %v595_v46, %v596_v18  ;;  %v1415_v35 = vld [vmem:[#allocation2 + $0x30] sm:$0xe]  ;;  %v4310_v38 = vld [vmem:[#allocation2 + $0x3c] sm:$0xff]  }
 0x102   : > { %v653_v29 = vsel %vm576_vm3, %v596_v18, 0.0  ;;  %v1463_v30 = vsel %vm4614_vm10, %v3763_v7, %v1462_v11  ;;  %v1464_v31 = vrot.slane %v1462_v11, 4  ;;  %v3936_v32 = vpack.c.bf16 %v597_v15, %v597_v15  ;;  %v1416_v48 = vld [vmem:[#allocation2 + $0x3c] sm:$0xe]  ;;  %v4706_v59 = vld [vmem:[#allocation2 + $0x40] sm:$0xf] }
 0x103   : > { %811 = vst.msk [vmem:[#allocation2 + $0x58] sm:$0xf] %vm787_vm5, %v3939_v22  ;;  %v3937_v49 = vpack.c.bf16 %v653_v29, %v653_v29  ;;  %v1459_v37 = vsel %vm4614_vm10, %v1457_v27, %v1458_v5  ;;  %v1465_v9 = vrot.slane %v4663_v21, 5  ;;  %v3764_v41 = vrot.slane %v1414_v13, 9  ;;  %v4718_v11 = vld [vmem:[#allocation2 + $0x44] sm:$0x1] }
 0x104   : > { %812 = vst.msk [vmem:[#allocation2 + $0x5c] sm:$0x1] %vm790_vm6, %v3940_v23  ;;  %v3771_v39 = vcombine.low %v1456_v26, %v1459_v37  ;;  %v4309_v40 = vld [vmem:[#allocation2 + $0x30] sm:$0xff]   ;;  %v1469_v42 = vrot.slane %v4655_v12, 5  ;;  %v1472_v43 = vrot.slane %v4669_v28, 5  ;;  %v3765_v10 = vrot.slane %v1415_v35, 9 }
 0x105   : > { %808 = vst.msk [vmem:[#allocation2 + $0x4c] sm:$0xf] %vm787_vm5, %v3936_v32  ;;  %v1466_v44 = vsel %vm4614_vm10, %v1464_v31, %v1465_v9  ;;  %v4688_v45 = vld [vmem:[#allocation2 + $0x34] sm:$0xf]  ;;  %v4690_v46 = vld [vmem:[#allocation2 + $0x38] sm:$0x1]  ;;  %v4693_v50 = vadd.f32 %v4068_v8, %v4509_v36  ;;  %4080 = vmatprep.mubr.msk.bf16.mxu1 %vm884_vm7, %v4309_v40 }
 0x106   : > { %809 = vst.msk [vmem:[#allocation2 + $0x50] sm:$0x1] %vm790_vm6, %v3937_v49  ;;  %v1054_v47 = vshrl.u32 %v1026_v54, 16  ;;  %vm4697_vm13 = vcmp.eq.s32.totalorder %v530_v2, 1  ;;  %4109 = vmatmul.mubr.msk.bf16.vlgmr.msra.gmra.mxu0 %vm884_vm7, %v3771_v39  ;;  %v3772_v52 = vcombine.low %v1463_v30, %v1466_v44  ;;  %v1470_v53 = vsel %vm4614_vm10, %v3764_v41, %v1469_v42  ;;  %4081 = vmatmul.mubr.msk.bf16.gmra.mxu1 %vm884_vm7, %v4310_v38 }
 0x107   : > { %v1471_v57 = vrot.slane %v1469_v42, 4  ;;  %v1476_v58 = vrot.slane %v4688_v45, 5  ;;  %v1479_v2 = vrot.slane %v4690_v46, 5  ;;  %v1057_v63 = vshll.u32 %v1026_v54, 16  ;;  %4143 = vmatpush3.bf16.msra.mxu0 %v4566_v25  ;;  %v1417_v18 = vld [vmem:[#allocation2 + $0x48] sm:$0xe] }
 0x108   : > { %v1056_v62 = vrot.slane %v1054_v47, 4  ;;  %v1063_v0 = vshll.u32 %v4600_v1, 16  ;;  %4112 = vmatprep.mubr.msk.bf16.mxu0 %vm884_vm7, %v3772_v52  ;;  %v1067_v7 = vshrl.u32 %v4600_v1, 16  ;;  %4260 = vmatprep.subr.msk.bf16.mxu0 %vm909_vm2, %v4556_v20  ;;  %v1073_v25 = vshll.u32 %v4606_v6, 16  ;;  %v489_v20 = vpop.f32.mrf.mxu0 }
 0x109   : > { %v1473_v3 = vsel %vm4614_vm10, %v1471_v57, %v1472_v43  ;;  %v1477_v4 = vsel %vm4614_vm10, %v3765_v10, %v1476_v58  ;;  %v1478_v5 = vrot.slane %v1476_v58, 4  ;;  %v1059_v14 = vrot.slane %v1057_v63, 5 }
 0x10a   : > { %v3773_v13 = vcombine.low %v1470_v53, %v1473_v3  ;;  %v1065_v17 = vrot.slane %v1063_v0, 5  ;;  %v1069_v22 = vrot.slane %v1067_v7, 4  ;;  %v3766_v23 = vrot.slane %v1416_v48, 9  ;;  %v4312_v1 = vld [vmem:[#allocation2 + $0x54] sm:$0xff]  }
 0x10b   : > { %v1480_v54 = vsel %vm4614_vm10, %v1478_v5, %v1479_v2  ;;  %v1483_v26 = vrot.slane %v4706_v59, 5  ;;  %v1060_v15 = vor.u32 %v1059_v14, %v1056_v62  ;;  %v1075_v29 = vrot.slane %v1073_v25, 5  ;;  %v1032_v53 = vld [vmem:[#allocation2 + $0x18] sm:$0xf] }
 0x10c   : > { %v3774_v27 = vcombine.low %v1477_v4, %v1480_v54  ;;  %v1486_v30 = vrot.slane %v4718_v11, 5  ;;  %v4311_v31 = vld [vmem:[#allocation2 + $0x48] sm:$0xff]   ;;  %v1070_v35 = vor.u32 %v1069_v22, %v1065_v17  ;;  %v490_v37 = vadd.f32 %v4509_v36, %v489_v20  ;;  %v4775_v22 = vld [vmem:[#allocation2 + $0x58] sm:$0xf] }
 0x10d   : > { %v1484_v6 = vsel %vm4614_vm10, %v3766_v23, %v1483_v26  ;;  %v1485_v32 = vrot.slane %v1483_v26, 4  ;;  %v4729_v49 = vld [vmem:[#allocation2 + $0x4c] sm:$0xf]  ;;  %v1061_v9 = vrot.slane %v1060_v15, 4  ;;  %v4732_v38 = vld [vmem:[#allocation2 + $0x50] sm:$0x1]  ;;  %4084 = vmatprep.mubr.msk.bf16.mxu1 %vm884_vm7, %v4311_v31 }
 0x10e   : > { %v3767_v39 = vrot.slane %v1417_v18, 9  ;;  %v1490_v40 = vrot.slane %v4729_v49, 5  ;;  %v522_v41 = vmax.f32 %v4693_v50, 0.0  ;;  %4113 = vmatmul.mubr.msk.bf16.gmra.mxu0 %vm884_vm7, %v3773_v13  ;;  %v1071_v43 = vrot.slane %v1070_v35, 4  ;;  %4085 = vmatmul.mubr.msk.bf16.gmra.mxu1 %vm884_vm7, %v4312_v1 }
 0x10f   : > { %v1487_v8 = vsel %vm4614_vm10, %v1485_v32, %v1486_v30  ;;  %v1493_v44 = vrot.slane %v4732_v38, 5  ;;  %v520_v10 = vmax.f32 %v490_v37, 0.0  ;;  %4116 = vmatprep.mubr.msk.bf16.mxu0 %vm884_vm7, %v3774_v27  ;;  %v1066_v47 = vsel %vm4740_vm14, %v1061_v9, %v1065_v17  ;;  %v1418_v17 = vld [vmem:[#allocation2 + $0x54] sm:$0xe]  ;;  %v4781_v30 = vld [vmem:[#allocation2 + $0x5c] sm:$0x1]  ;;  %v4069_v32 = vpop.f32.mrf.mxu0 }
 0x110   : > { %v3775_v48 = vcombine.low %v1484_v6, %v1487_v8  ;;  %v1491_v50 = vsel %vm4614_vm10, %v3767_v39, %v1490_v40  ;;  %v1492_v52 = vrot.slane %v1490_v40, 4  ;;  %v1076_v57 = vsel %vm4740_vm14, %v1071_v43, %v1075_v29  ;;  %v1867_v37 = vld [vmem:[#allocation2 + $0xc] sm:$0xf] }
 0x111   : > { %v4757_v58 = vsel %vm4697_vm13, %v522_v41, 0.0  ;;  %v4759_v2 = vrot.slane %v520_v10, 7  ;;  %v1080_v62 = vrot.slane %v1078_v55, 4  ;;  %v3745_v63 = vcombine.low %v1066_v47, %v1076_v57  ;;  %v4797_v47 = vld [vmem:[#allocation2 + $0x10] sm:$0xf] }
 0x112   : > { %v1494_v0 = vsel %vm4614_vm10, %v1492_v52, %v1493_v44  ;;  %v604_v3 = vrot.slane %v4757_v58, 7  ;;  %v1081_v4 = vshll.u32 %v4577_v33, 16  ;;  %v1094_v13 = vor.u32 %v4647_v61, %v4645_v60  ;;  %v4801_v57 = vld [vmem:[#allocation2 + $0x14] sm:$0x1] }
 0x113   : > { %v3776_v5 = vcombine.low %v1491_v50, %v1494_v0  ;;  %v645_v7 = vsel %vm576_vm3, 0.0, %v4759_v2  ;;  %v1102_v14 = vshrl.u32 %v1032_v53, 16  ;;  %4090 = vmatprep.mubr.msk.bf16.mxu1 %vm884_vm7, %v3745_v63  ;;  %v1105_v54 = vshll.u32 %v1032_v53, 16  ;;  %v492_v63 = vpop.f32.mrf.mxu0 }
 0x114   : > { %v646_v55 = vsel %vm576_vm3, 0.0, %v604_v3  ;;  %v3941_v25 = vpack.c.bf16 %v645_v7, %v645_v7  ;;  %v1083_v18 = vrot.slane %v1081_v4, 5  ;;  %v1095_v23 = vrot.slane %v1094_v13, 4  ;;  %v4808_v7 = vld [vmem:[%s5769_s5 + $0xa] sm:$0x3] }
 0x115   : > { %v3944_v33 = vpack.c.bf16 %v646_v55, %v646_v55  ;;  %v1104_v26 = vrot.slane %v1102_v14, 4  ;;  %v1111_v27 = vshll.u32 %v4640_v56, 16  ;;  %v1107_v1 = vrot.slane %v1105_v54, 5 }
 0x116   : > { %813 = vst.msk [vmem:[#allocation2 + $0x60] sm:$0xf] %vm787_vm5, %v3941_v25  ;;  %v1084_v61 = vor.u32 %v1083_v18, %v1080_v62  ;;  %v1115_v15 = vshrl.u32 %v4640_v56, 16  ;;  %v1121_v29 = vshll.u32 %v4663_v21, 16  ;;  %4117 = vmatmul.mubr.msk.bf16.gmra.mxu0 %vm884_vm7, %v3775_v48  ;;  %v1100_v20 = vsel %vm4740_vm14, %v1095_v23, %v4661_v19 }
 0x117   : > { %816 = vst.msk [vmem:[#allocation2 + $0x6c] sm:$0xf] %vm787_vm5, %v3944_v33  ;;  %v1113_v31 = vrot.slane %v1111_v27, 5  ;;  %v3768_v35 = vrot.slane %v1418_v17, 9  ;;  %v1497_v6 = vrot.slane %v4775_v22, 5  ;;  %4120 = vmatprep.mubr.msk.bf16.mxu0 %vm884_vm7, %v3776_v5  ;;  %v1108_v21 = vor.u32 %v1107_v1, %v1104_v26 }
 0x118   : > { %v1085_v56 = vrot.slane %v1084_v61, 4  ;;  %v1117_v9 = vrot.slane %v1115_v15, 4  ;;  %v1123_v39 = vrot.slane %v1121_v29, 5  ;;  %v1500_v43 = vrot.slane %v4781_v30, 5  ;;  %v1035_v61 = vld [vmem:[#allocation2 + $0x24] sm:$0xf] }
 0x119   : > { %v1498_v40 = vsel %vm4614_vm10, %v3768_v35, %v1497_v6  ;;  %v1499_v41 = vrot.slane %v1497_v6, 4  ;;  %v501_v19 = vadd.f32 %v4069_v32, %v4509_v36  ;;  %v1109_v44 = vrot.slane %v1108_v21, 4  ;;  %v1038_v21 = vld [vmem:[#allocation2 + $0x30] sm:$0xf] }
 0x11a   : > { %v1090_v8 = vsel %vm4740_vm14, %v1085_v56, %v4645_v60  ;;  %v1118_v10 = vor.u32 %v1117_v9, %v1113_v31  ;;  %v1892_v48 = vshrl.u32 %v1867_v37, 16  ;;  %v1895_v62 = vshll.u32 %v1867_v37, 16 }
 0x11b   : > { %v3746_v50 = vcombine.low %v1090_v8, %v1100_v20  ;;  %v1501_v52 = vsel %vm4614_vm10, %v1499_v41, %v1500_v43  ;;  %v523_v53 = vmax.f32 %v501_v19, 0.0  ;;  %v1114_v0 = vsel %vm4740_vm14, %v1109_v44, %v1113_v31 }
 0x11c   : > { %v1119_v4 = vrot.slane %v1118_v10, 4  ;;  %v3777_v5 = vcombine.low %v1498_v40, %v1501_v52  ;;  %v1894_v60 = vrot.slane %v1892_v48, 4  ;;  %v1897_v14 = vrot.slane %v1895_v62, 5  ;;  %v1870_v40 = vld [vmem:[#allocation2 + $0x18] sm:$0xf] }
 0x11d   : > { %4091 = vmatmul.mubr.msk.bf16.vlgmr.msra.gmra.mxu1 %vm884_vm7, %v3746_v50  ;;  %v555_v13 = vsel %vm4697_vm13, %v523_v53, 0.0  ;;  %v1901_v17 = vshll.u32 %v4797_v47, 16  ;;  %v1905_v55 = vshrl.u32 %v4797_v47, 16  ;;  %v1911_v54 = vshll.u32 %v4801_v57, 16 }
 0x11e   : > { %4125 = vmatpush3.bf16.msra.mxu1 %v4562_v24  ;;  %v1124_v25 = vsel %vm4740_vm14, %v1119_v4, %v1123_v39  ;;  %v605_v18 = vrot.slane %v555_v13, 7  ;;  %v493_v33 = vadd.f32 %v4509_v36, %v492_v63  ;;  %4121 = vmatmul.mubr.msk.bf16.gmra.mxu0 %vm884_vm7, %v3777_v5  ;;  %v1898_v51 = vor.u32 %v1897_v14, %v1894_v60  ;;  %v4848_v5 = vld [vmem:[#allocation2 + $0x20] sm:$0x1]  ;;  %v1873_v60 = vld [vmem:[#allocation2 + $0x24] sm:$0xf] }
 0x11f   : > { %v3747_v23 = vcombine.low %v1114_v0, %v1124_v25  ;;  %v1903_v26 = vrot.slane %v1901_v17, 5  ;;  %v1907_v27 = vrot.slane %v1905_v55, 4  ;;  %4259 = vmatprep.subr.msk.bf16.mxu1 %vm909_vm2, %v4808_v7  ;;  %v1913_v15 = vrot.slane %v1911_v54, 5 }
 0x120   : > { %v606_v24 = vsel %vm576_vm3, %v604_v3, %v605_v18  ;;  %v656_v1 = vsel %vm576_vm3, %v605_v18, 0.0  ;;  %v521_v29 = vmax.f32 %v493_v33, 0.0  ;;  %v1899_v31 = vrot.slane %v1898_v51, 4 }
 0x121   : > { %4094 = vmatprep.mubr.msk.bf16.mxu1 %vm884_vm7, %v3747_v23  ;;  %v3945_v36 = vpack.c.bf16 %v606_v24, %v606_v24  ;;  %v3946_v20 = vpack.c.bf16 %v656_v1, %v656_v1  ;;  %v1908_v35 = vor.u32 %v1907_v27, %v1903_v26  ;;  %v1126_v32 = vshrl.u32 %v1035_v61, 16 }
 0x122   : > { %v602_v6 = vrot.slane %v521_v29, 7  ;;  %v1129_v37 = vshll.u32 %v1035_v61, 16  ;;  %v1135_v56 = vshll.u32 %v4655_v12, 16  ;;  %v1904_v58 = vsel %vm4740_vm14, %v1899_v31, %v1903_v26 }
 0x123   : > { %817 = vst.msk [vmem:[#allocation2 + $0x70] sm:$0xf] %vm787_vm5, %v3945_v36  ;;  %v1909_v3 = vrot.slane %v1908_v35, 4  ;;  %v1139_v9 = vshrl.u32 %v4655_v12, 16  ;;  %v1145_v39 = vshll.u32 %v4669_v28, 16  ;;  %v1128_v19 = vrot.slane %v1126_v32, 4 }
 0x124   : > { %818 = vst.msk [vmem:[#allocation2 + $0x74] sm:$0x1] %vm790_vm6, %v3946_v20  ;;  %v603_v41 = vsel %vm576_vm3, %v4759_v2, %v602_v6  ;;  %v655_v43 = vsel %vm576_vm3, %v602_v6, 0.0  ;;  %v1131_v8 = vrot.slane %v1129_v37, 5  ;;  %v1137_v50 = vrot.slane %v1135_v56, 5 }
 0x125   : > { %v1914_v44 = vsel %vm4740_vm14, %v1909_v3, %v1913_v15  ;;  %v3942_v10 = vpack.c.bf16 %v603_v41, %v603_v41  ;;  %v3943_v48 = vpack.c.bf16 %v655_v43, %v655_v43  ;;  %v1141_v12 = vrot.slane %v1139_v9, 4  ;;  %v4842_v28 = vld [vmem:[#allocation2 + $0x1c] sm:$0xf]  ;;  %v4856_v15 = vld [vmem:[#allocation2 + $0x28] sm:$0xf] }
 0x126   : > { %v4840_v52 = vcombine.low %v1904_v58, %v1914_v44  ;;  %v1132_v53 = vor.u32 %v1131_v8, %v1128_v19  ;;  %v1147_v62 = vrot.slane %v1145_v39, 5  ;;  %v1150_v2 = vshrl.u32 %v1038_v21, 16  ;;  %v4862_v20 = vld [vmem:[#allocation2 + $0x2c] sm:$0x1]  ;;  %v1041_v9 = vld [vmem:[#allocation2 + $0x3c] sm:$0xf] }
 0x127   : > { %814 = vst.msk [vmem:[#allocation2 + $0x64] sm:$0xf] %vm787_vm5, %v3942_v10  ;;  %v1153_v63 = vshll.u32 %v1038_v21, 16  ;;  %v1159_v0 = vshll.u32 %v4688_v45, 16  ;;  %v1163_v4 = vshrl.u32 %v4688_v45, 16  ;;  %v1142_v14 = vor.u32 %v1141_v12, %v1137_v50 }
 0x128   : > { %815 = vst.msk [vmem:[#allocation2 + $0x68] sm:$0x1] %vm790_vm6, %v3943_v48  ;;  %4144 = vmatprep.mubr.msk.bf16.mxu0 %vm884_vm7, %v4840_v52  ;;  %v1133_v13 = vrot.slane %v1132_v53, 4  ;;  %v1169_v17 = vshll.u32 %v4690_v46, 16  ;;  %v1916_v55 = vshrl.u32 %v1870_v40, 16  ;;  %v1152_v25 = vrot.slane %v1150_v2, 4 }
 0x129   : > { %v1155_v18 = vrot.slane %v1153_v63, 5  ;;  %v1161_v54 = vrot.slane %v1159_v0, 5  ;;  %v1165_v33 = vrot.slane %v1163_v4, 4  ;;  %v1143_v51 = vrot.slane %v1142_v14, 4 }
 0x12a   : > { %v1138_v23 = vsel %vm4740_vm14, %v1133_v13, %v1137_v50  ;;  %v1171_v45 = vrot.slane %v1169_v17, 5  ;;  %v1918_v26 = vrot.slane %v1916_v55, 4  ;;  %v1919_v24 = vshll.u32 %v1870_v40, 16  ;;  %v1044_v17 = vld [vmem:[#allocation2 + $0x48] sm:$0xf] }
 0x12b   : > { %v1156_v27 = vor.u32 %v1155_v18, %v1152_v25  ;;  %v1166_v61 = vor.u32 %v1165_v33, %v1161_v54  ;;  %v1925_v1 = vshll.u32 %v4842_v28, 16  ;;  %v1148_v46 = vsel %vm4740_vm14, %v1143_v51, %v1147_v62 }
 0x12c   : > { %v1929_v29 = vshrl.u32 %v4842_v28, 16  ;;  %v1935_v36 = vshll.u32 %v4848_v5, 16  ;;  %v1940_v31 = vshrl.u32 %v1873_v60, 16  ;;  %v3748_v35 = vcombine.low %v1138_v23, %v1148_v46 }
 0x12d   : > { %v1157_v6 = vrot.slane %v1156_v27, 4  ;;  %v1167_v32 = vrot.slane %v1166_v61, 4  ;;  %v1921_v37 = vrot.slane %v1919_v24, 5  ;;  %v1927_v56 = vrot.slane %v1925_v1, 5 }
 0x12e   : > { %v1931_v21 = vrot.slane %v1929_v29, 4  ;;  %v1937_v58 = vrot.slane %v1935_v36, 5  ;;  %v1942_v3 = vrot.slane %v1940_v31, 4  ;;  %4095 = vmatmul.mubr.msk.bf16.gmra.mxu1 %vm884_vm7, %v3748_v35  ;;  %v1943_v43 = vshll.u32 %v1873_v60, 16 }
 0x12f   : > { %v1162_v39 = vsel %vm4740_vm14, %v1157_v6, %v1161_v54  ;;  %v1172_v40 = vsel %vm4740_vm14, %v1167_v32, %v1171_v45  ;;  %v1922_v41 = vor.u32 %v1921_v37, %v1918_v26  ;;  %v1949_v44 = vshll.u32 %v4856_v15, 16  ;;  %v1876_v26 = vld [vmem:[#allocation2 + $0x30] sm:$0xf] }
 0x130   : > { %v3749_v19 = vcombine.low %v1162_v39, %v1172_v40  ;;  %v1932_v8 = vor.u32 %v1931_v21, %v1927_v56  ;;  %v1953_v10 = vshrl.u32 %v4856_v15, 16  ;;  %v1945_v50 = vrot.slane %v1943_v43, 5  ;;  %v4893_v32 = vld [vmem:[%s5769_s5 + $0x10] sm:$0x3] }
 0x131   : > { %v1923_v48 = vrot.slane %v1922_v41, 4  ;;  %v1959_v53 = vshll.u32 %v4862_v20, 16  ;;  %v1174_v12 = vshrl.u32 %v1041_v9, 16  ;;  %v1951_v2 = vrot.slane %v1949_v44, 5 }
 0x132   : > { %4098 = vmatprep.mubr.msk.bf16.mxu1 %vm884_vm7, %v3749_v19  ;;  %v1933_v62 = vrot.slane %v1932_v8, 4  ;;  %v1955_v63 = vrot.slane %v1953_v10, 4  ;;  %v1177_v0 = vshll.u32 %v1041_v9, 16  ;;  %v1946_v60 = vor.u32 %v1945_v50, %v1942_v3  ;;  %v4898_v3 = vld [vmem:[#allocation2 + $0x34] sm:$0xf] }
 0x133   : > { %v1928_v4 = vsel %vm4740_vm14, %v1923_v48, %v1927_v56  ;;  %v1961_v13 = vrot.slane %v1959_v53, 5  ;;  %v1176_v14 = vrot.slane %v1174_v12, 4  ;;  %v1183_v54 = vshll.u32 %v4706_v59, 16  ;;  %v4907_v8 = vld [vmem:[#allocation2 + $0x38] sm:$0x1] }
 0x134   : > { %v1938_v55 = vsel %vm4740_vm14, %v1933_v62, %v1937_v58  ;;  %v1956_v25 = vor.u32 %v1955_v63, %v1951_v2  ;;  %v1179_v18 = vrot.slane %v1177_v0, 5  ;;  %v1947_v23 = vrot.slane %v1946_v60, 4  ;;  %v1879_v53 = vld [vmem:[#allocation2 + $0x3c] sm:$0xf]  ;;  %v4913_v63 = vld [vmem:[#allocation2 + $0x40] sm:$0xf] }
 0x135   : > { %v4878_v33 = vcombine.low %v1928_v4, %v1938_v55  ;;  %v1187_v51 = vshrl.u32 %v4706_v59, 16  ;;  %v1193_v45 = vshll.u32 %v4718_v11, 16  ;;  %v1185_v24 = vrot.slane %v1183_v54, 5 }
 0x136   : > { %v1957_v27 = vrot.slane %v1956_v25, 4  ;;  %v1180_v61 = vor.u32 %v1179_v18, %v1176_v14  ;;  %v1198_v1 = vshrl.u32 %v1044_v17, 16  ;;  %v1952_v46 = vsel %vm4740_vm14, %v1947_v23, %v1951_v2  ;;  %v4918_v25 = vld [vmem:[#allocation2 + $0x44] sm:$0x1] }
 0x137   : > { %4145 = vmatmul.mubr.msk.bf16.vlgmr.msra.gmra.mxu0 %vm884_vm7, %v4878_v33  ;;  %v1189_v29 = vrot.slane %v1187_v51, 4  ;;  %v1195_v36 = vrot.slane %v1193_v45, 5  ;;  %v1201_v31 = vshll.u32 %v1044_v17, 16  ;;  %v1207_v11 = vshll.u32 %v4729_v49, 16 }
 0x138   : > { %v1962_v35 = vsel %vm4740_vm14, %v1957_v27, %v1961_v13  ;;  %v1181_v59 = vrot.slane %v1180_v61, 4  ;;  %v1200_v6 = vrot.slane %v1198_v1, 4  ;;  %4179 = vmatpush3.bf16.msra.mxu0 %v4581_v34  ;;  %v1211_v58 = vshrl.u32 %v4729_v49, 16 }
 0x139   : > { %v4895_v37 = vcombine.low %v1952_v46, %v1962_v35  ;;  %v1190_v56 = vor.u32 %v1189_v29, %v1185_v24  ;;  %v1203_v21 = vrot.slane %v1201_v31, 5  ;;  %4262 = vmatprep.subr.msk.bf16.mxu0 %vm909_vm2, %v4893_v32  ;;  %v1209_v34 = vrot.slane %v1207_v11, 5 }
 0x13a   : > { %v1186_v9 = vsel %vm4740_vm14, %v1181_v59, %v1185_v24  ;;  %v1217_v39 = vshll.u32 %v4732_v38, 16  ;;  %v1964_v40 = vshrl.u32 %v1876_v26, 16  ;;  %v1213_v19 = vrot.slane %v1211_v58, 4 }
 0x13b   : > { %4148 = vmatprep.mubr.msk.bf16.mxu0 %vm884_vm7, %v4895_v37  ;;  %v1191_v41 = vrot.slane %v1190_v56, 4  ;;  %v1204_v43 = vor.u32 %v1203_v21, %v1200_v6  ;;  %v1967_v49 = vshll.u32 %v1876_v26, 16  ;;  %v1973_v48 = vshll.u32 %v4898_v3, 16  ;;  %v1047_v26 = vld [vmem:[#allocation2 + $0x54] sm:$0xf] }
 0x13c   : > { %v1219_v44 = vrot.slane %v1217_v39, 5  ;;  %v1966_v10 = vrot.slane %v1964_v40, 4  ;;  %v1977_v50 = vshrl.u32 %v4898_v3, 16  ;;  %v1214_v62 = vor.u32 %v1213_v19, %v1209_v34 }
 0x13d   : > { %v1196_v38 = vsel %vm4740_vm14, %v1191_v41, %v1195_v36  ;;  %v1205_v12 = vrot.slane %v1204_v43, 4  ;;  %v1969_v2 = vrot.slane %v1967_v49, 5  ;;  %v1975_v4 = vrot.slane %v1973_v48, 5  ;;  %v4934_v43 = vld [vmem:[#allocation2 + $0x4c] sm:$0xf] }
 0x13e   : > { %v3750_v0 = vcombine.low %v1186_v9, %v1196_v38  ;;  %v1979_v60 = vrot.slane %v1977_v50, 4  ;;  %v1983_v13 = vshll.u32 %v4907_v8, 16  ;;  %v1215_v17 = vrot.slane %v1214_v62, 4 }
 0x13f   : > { %v1210_v14 = vsel %vm4740_vm14, %v1205_v12, %v1209_v34  ;;  %v1970_v55 = vor.u32 %v1969_v2, %v1966_v10  ;;  %v1988_v18 = vshrl.u32 %v1879_v53, 16  ;;  %v1991_v51 = vshll.u32 %v1879_v53, 16  ;;  %v1882_v34 = vld [vmem:[#allocation2 + $0x48] sm:$0xf]  ;;  %v4939_v53 = vld [vmem:[#allocation2 + $0x50] sm:$0x1] }
 0x140   : > { %4099 = vmatmul.mubr.msk.bf16.gmra.mxu1 %vm884_vm7, %v3750_v0  ;;  %v1980_v54 = vor.u32 %v1979_v60, %v1975_v4  ;;  %v1985_v23 = vrot.slane %v1983_v13, 5  ;;  %v1997_v45 = vshll.u32 %v4913_v63, 16  ;;  %v1220_v27 = vsel %vm4740_vm14, %v1215_v17, %v1219_v44  ;;  %v1885_v60 = vld [vmem:[#allocation2 + $0x54] sm:$0xf] }
 0x141   : > { %v1971_v61 = vrot.slane %v1970_v55, 4  ;;  %v1990_v24 = vrot.slane %v1988_v18, 4  ;;  %v2001_v1 = vshrl.u32 %v4913_v63, 16  ;;  %v3751_v46 = vcombine.low %v1210_v14, %v1220_v27  ;;  %v4947_v55 = vld [vmem:[#allocation2 + $0x58] sm:$0xf] }
 0x142   : > { %v1981_v29 = vrot.slane %v1980_v54, 4  ;;  %v1993_v36 = vrot.slane %v1991_v51, 5  ;;  %v1999_v31 = vrot.slane %v1997_v45, 5  ;;  %v2007_v6 = vshll.u32 %v4918_v25, 16 }
 0x143   : > { %v1976_v35 = vsel %vm4740_vm14, %v1971_v61, %v1975_v4  ;;  %v2003_v59 = vrot.slane %v2001_v1, 4  ;;  %v1222_v11 = vshrl.u32 %v1047_v26, 16  ;;  %4102 = vmatprep.mubr.msk.bf16.mxu1 %vm884_vm7, %v3751_v46  ;;  %v1225_v58 = vshll.u32 %v1047_v26, 16  ;;  %v4955_v1 = vld [vmem:[#allocation2 + $0x5c] sm:$0x1] }
 0x144   : > { %v1986_v56 = vsel %vm4740_vm14, %v1981_v29, %v1985_v23  ;;  %v1994_v21 = vor.u32 %v1993_v36, %v1990_v24  ;;  %v1231_v9 = vshll.u32 %v4775_v22, 16  ;;  %v1235_v10 = vshrl.u32 %v4775_v22, 16 }
 0x145   : > { %v4932_v39 = vcombine.low %v1976_v35, %v1986_v56  ;;  %v2004_v40 = vor.u32 %v2003_v59, %v1999_v31  ;;  %v1224_v41 = vrot.slane %v1222_v11, 4  ;;  %v1227_v49 = vrot.slane %v1225_v58, 5 }
 0x146   : > { %v1995_v19 = vrot.slane %v1994_v21, 4  ;;  %v1233_v44 = vrot.slane %v1231_v9, 5  ;;  %v2009_v50 = vrot.slane %v2007_v6, 5  ;;  %v2012_v38 = vshrl.u32 %v1882_v34, 16  ;;  %v1888_v6 = vld [vmem:[#allocation2 + $0x60] sm:$0xf] }
 0x147   : > { %4149 = vmatmul.mubr.msk.bf16.gmra.mxu0 %vm884_vm7, %v4932_v39  ;;  %v2005_v48 = vrot.slane %v2004_v40, 4  ;;  %v2015_v12 = vshll.u32 %v1882_v34, 16  ;;  %v1228_v62 = vor.u32 %v1227_v49, %v1224_v41  ;;  %v1237_v2 = vrot.slane %v1235_v10, 4  ;;  %v4963_v9 = vld [vmem:[#allocation2 + $0x64] sm:$0xf]  ;;  %v4313_v49 = vld [vmem:[#allocation2 + $0xc] sm:$0xff]  }
 0x148   : > { %v1241_v0 = vshll.u32 %v4781_v30, 16  ;;  %v2021_v4 = vshll.u32 %v4934_v43, 16  ;;  %v2000_v13 = vsel %vm4740_vm14, %v1995_v19, %v1999_v31  ;;  %v2014_v14 = vrot.slane %v2012_v38, 4 }
 0x149   : > { %v2010_v22 = vsel %vm4740_vm14, %v2005_v48, %v2009_v50  ;;  %v2017_v17 = vrot.slane %v2015_v12, 5  ;;  %v1229_v54 = vrot.slane %v1228_v62, 4  ;;  %v1238_v23 = vor.u32 %v1237_v2, %v1233_v44  ;;  %v4966_v48 = vld [vmem:[#allocation2 + $0x68] sm:$0x1] }
 0x14a   : > { %v4949_v18 = vcombine.low %v2000_v13, %v2010_v22  ;;  %v2023_v51 = vrot.slane %v2021_v4, 5  ;;  %v2025_v30 = vshrl.u32 %v4934_v43, 16  ;;  %v2031_v26 = vshll.u32 %v4939_v53, 16 }
 0x14b   : > { %v2018_v45 = vor.u32 %v2017_v17, %v2014_v14  ;;  %v2036_v27 = vshrl.u32 %v1885_v60, 16  ;;  %v1239_v61 = vrot.slane %v1238_v23, 4  ;;  %v1243_v24 = vrot.slane %v1241_v0, 5 }
 0x14c   : > { %4152 = vmatprep.mubr.msk.bf16.mxu0 %vm884_vm7, %v4949_v18  ;;  %v2039_v46 = vshll.u32 %v1885_v60, 16  ;;  %v2045_v29 = vshll.u32 %v4947_v55, 16  ;;  %v1234_v36 = vsel %vm4740_vm14, %v1229_v54, %v1233_v44  ;;  %v2027_v35 = vrot.slane %v2025_v30, 4 }
 0x14d   : > { %v2019_v31 = vrot.slane %v2018_v45, 4  ;;  %v2038_v59 = vrot.slane %v2036_v27, 4  ;;  %v1244_v11 = vsel %vm4740_vm14, %v1239_v61, %v1243_v24  ;;  %v2049_v58 = vshrl.u32 %v4947_v55, 16  ;;  %v2249_v45 = vld [vmem:[#allocation2 + $0xc] sm:$0xe] }
 0x14e   : > { %v2041_v56 = vrot.slane %v2039_v46, 5  ;;  %v2047_v21 = vrot.slane %v2045_v29, 5  ;;  %v3752_v34 = vcombine.low %v1234_v36, %v1244_v11  ;;  %v2028_v40 = vor.u32 %v2027_v35, %v2023_v51  ;;  %v2250_v36 = vld [vmem:[#allocation2 + $0x18] sm:$0xe] }
 0x14f   : > { %v2033_v41 = vrot.slane %v2031_v26, 5  ;;  %v2055_v19 = vshll.u32 %v4955_v1, 16  ;;  %v2051_v10 = vrot.slane %v2049_v58, 4  ;;  %v2060_v50 = vshrl.u32 %v1888_v6, 16 }
 0x150   : > { %v2042_v44 = vor.u32 %v2041_v56, %v2038_v59  ;;  %v2063_v38 = vshll.u32 %v1888_v6, 16  ;;  %4103 = vmatmul.mubr.msk.bf16.gmra.mxu1 %vm884_vm7, %v3752_v34  ;;  %v2024_v12 = vsel %vm4740_vm14, %v2019_v31, %v2023_v51  ;;  %v2029_v62 = vrot.slane %v2028_v40, 4  ;;  %v4314_v56 = vld [vmem:[#allocation2 + $0x18] sm:$0xff]  }
 0x151   : > { %v2069_v2 = vshll.u32 %v4963_v9, 16  ;;  %v2073_v0 = vshrl.u32 %v4963_v9, 16  ;;  %4126 = vmatprep.mubr.msk.bf16.mxu1 %vm884_vm7, %v4313_v49  ;;  %v2052_v60 = vor.u32 %v2051_v10, %v2047_v21  ;;  %v2062_v13 = vrot.slane %v2060_v50, 4  ;;  %v2251_v49 = vld [vmem:[#allocation2 + $0x24] sm:$0xe] }
 0x152   : > { %v2043_v4 = vrot.slane %v2042_v44, 4  ;;  %v2065_v22 = vrot.slane %v2063_v38, 5  ;;  %v2034_v14 = vsel %vm4740_vm14, %v2029_v62, %v2033_v41  ;;  %v2079_v23 = vshll.u32 %v4966_v48, 16 }
 0x153   : > { %v2071_v17 = vrot.slane %v2069_v2, 5  ;;  %v2075_v54 = vrot.slane %v2073_v0, 4  ;;  %v4977_v51 = vcombine.low %v2024_v12, %v2034_v14  ;;  %v2053_v30 = vrot.slane %v2052_v60, 4 }
 0x154   : > { %v2057_v26 = vrot.slane %v2055_v19, 5  ;;  %v2066_v27 = vor.u32 %v2065_v22, %v2062_v13  ;;  %v2388_v61 = vsel %vm909_vm2, %v4808_v7, 0  ;;  %v2081_v46 = vrot.slane %v2079_v23, 5  ;;  %v4315_v7 = vld [vmem:[#allocation2 + $0x24] sm:$0xff]   ;;  %v4316_v13 = vld [vmem:[#allocation2 + $0x18] sm:$0xff]  }
 0x155   : > { %v2076_v24 = vor.u32 %v2075_v54, %v2071_v17  ;;  %v2283_v29 = vrot.slane %v4797_v47, 5  ;;  %4153 = vmatmul.mubr.msk.bf16.gmra.mxu0 %vm884_vm7, %v4977_v51  ;;  %v2048_v31 = vsel %vm4740_vm14, %v2043_v4, %v2047_v21  ;;  %v3820_v6 = vrot.slane %v2249_v45, 9  ;;  %v3862_v21 = vld [vmem:[%s5769_s5 + $0xe] sm:$0x3]  ;;  %v4318_v54 = vld [vmem:[#allocation2 + $0x3c] sm:$0xff]   ;;  %v4319_v23 = vld [vmem:[#allocation2 + $0x24] sm:$0xff]  }
 0x156   : > { %v2058_v35 = vsel %vm4740_vm14, %v2053_v30, %v2057_v26  ;;  %v2067_v59 = vrot.slane %v2066_v27, 4  ;;  %v2286_v47 = vrot.slane %v4801_v57, 5  ;;  %v3821_v41 = vrot.slane %v2250_v36, 9  ;;  %v5046_v30 = vld [vmem:[#allocation2 + $0x1c] sm:$0xf]  ;;  %v4320_v26 = vld [vmem:[#allocation2 + $0x30] sm:$0xff]  }
 0x157   : > { %v4988_v11 = vcombine.low %v2048_v31, %v2058_v35  ;;  %v2077_v58 = vrot.slane %v2076_v24, 4  ;;  %v2285_v34 = vrot.slane %v2283_v29, 4  ;;  %v2290_v19 = vrot.slane %v4842_v28, 5  ;;  %v4321_v27 = vld [vmem:[#allocation2 + $0x48] sm:$0xff]   ;;  %v3084_v35 = vld [vmem:[#allocation2 + $0x18] sm:$0xe] }
 0x158   : > { %v2072_v40 = vsel %vm4740_vm14, %v2067_v59, %v2071_v17  ;;  %4127 = vmatmul.mubr.msk.bf16.vlgmr.msra.gmra.mxu1 %vm884_vm7, %v4314_v56  ;;  %v5004_v57 = vsel %vm4614_vm10, %v3820_v6, %v2283_v29  ;;  %v2297_v50 = vrot.slane %v4856_v15, 5  ;;  %v2293_v62 = vrot.slane %v4848_v5, 5  ;;  %v4317_v17 = vld [vmem:[#allocation2 + $0x30] sm:$0xff]   ;;  %v5051_v24 = vld [vmem:[#allocation2 + $0x28] sm:$0xf]  ;;  %v4323_v6 = vld [vmem:[#allocation2 + $0x3c] sm:$0xff]  }
 0x159   : > { %4156 = vmatprep.mubr.msk.bf16.mxu0 %vm884_vm7, %v4988_v11  ;;  %v2082_v44 = vsel %vm4740_vm14, %v2077_v58, %v2081_v46  ;;  %v5008_v10 = vsel %vm4614_vm10, %v2285_v34, %v2286_v47  ;;  %4161 = vmatpush3.bf16.msra.mxu1 %v2388_v61  ;;  %v2292_v12 = vrot.slane %v2290_v19, 4  ;;  %v3822_v2 = vrot.slane %v2251_v49, 9  ;;  %v4322_v46 = vld [vmem:[#allocation2 + $0x54] sm:$0xff]   ;;  %v2252_v56 = vld [vmem:[#allocation2 + $0x30] sm:$0xe]  ;;  %v4324_v34 = vld [vmem:[#allocation2 + $0x48] sm:$0xff]  }
 0x15a   : > { %4130 = vmatprep.mubr.msk.bf16.mxu1 %vm884_vm7, %v4315_v7  ;;  %v5012_v28 = vcombine.low %v2072_v40, %v2082_v44  ;;  %v3829_v38 = vcombine.low %v5004_v57, %v5008_v10  ;;  %4261 = vmatprep.subr.msk.bf16.mxu1 %vm909_vm2, %v3862_v21  ;;  %v2299_v0 = vrot.slane %v2297_v50, 4  ;;  %v2300_v4 = vrot.slane %v4862_v20, 5  ;;  %v5060_v58 = vld [vmem:[#allocation2 + $0x34] sm:$0xf]  ;;  %v2253_v47 = vld [vmem:[#allocation2 + $0x3c] sm:$0xe] }
 0x15b   : > { %v5021_v15 = vsel %vm4614_vm10, %v3821_v41, %v2290_v19  ;;  %v5025_v60 = vsel %vm4614_vm10, %v2292_v12, %v2293_v62  ;;  %v5031_v5 = vsel %vm4614_vm10, %v3822_v2, %v2297_v50  ;;  %v3223_v45 = vsel %vm909_vm2, %v4893_v32, 0  ;;  %v5056_v32 = vld [vmem:[#allocation2 + $0x20] sm:$0x1]  ;;  %v5063_v40 = vld [vmem:[#allocation2 + $0x2c] sm:$0x1] }
 0x15c   : > { %5781 = vst [vmem:[#allocation3_spill] sm:$0xff] %v5012_v28  ;;  %v3830_v22 = vcombine.low %v5021_v15, %v5025_v60  ;;  %v5035_v14 = vsel %vm4614_vm10, %v2299_v0, %v2300_v4  ;;  %v3118_v61 = vrot.slane %v5046_v30, 5  ;;  %v2304_v29 = vrot.slane %v4898_v3, 5  ;;  %v3085_v49 = vld [vmem:[#allocation2 + $0x24] sm:$0xe] }
 0x15d   : > { %4157 = vmatmul.mubr.msk.bf16.gmra.mxu0 %vm884_vm7, %v5012_v28  ;;  %v3831_v20 = vcombine.low %v5031_v5, %v5035_v14  ;;  %v2311_v36 = vrot.slane %v4913_v63, 5  ;;  %v3125_v31 = vrot.slane %v5051_v24, 5  ;;  %v3121_v3 = vrot.slane %v5056_v32, 5  ;;  %v4325_v50 = vld [vmem:[#allocation2 + $0x60] sm:$0xff]  }
 0x15e   : > { %4180 = vmatprep.mubr.msk.bf16.mxu0 %vm884_vm7, %v4316_v13  ;;  %v3120_v59 = vrot.slane %v3118_v61, 4  ;;  %v2306_v7 = vrot.slane %v2304_v29, 4  ;;  %v5067_v41 = vsel %vm909_vm2, %v3862_v21, 0  ;;  %v2307_v63 = vrot.slane %v4907_v8, 5 }
 0x15f   : > { %v2313_v19 = vrot.slane %v2311_v36, 4  ;;  %v3127_v44 = vrot.slane %v3125_v31, 4  ;;  %v3879_v12 = vrot.slane %v3084_v35, 9  ;;  %v3823_v2 = vrot.slane %v2252_v56, 9 }
 0x160   : > { %4131 = vmatmul.mubr.msk.bf16.gmra.mxu1 %vm884_vm7, %v4317_v17  ;;  %v5073_v62 = vsel %vm4614_vm10, %v3120_v59, %v3121_v3  ;;  %v3132_v0 = vrot.slane %v5060_v58, 5  ;;  %v5078_v21 = vsel %vm4614_vm10, %v2306_v7, %v2307_v63  ;;  %v2314_v8 = vrot.slane %v4918_v25, 5  ;;  %v5083_v17 = vld [vmem:[#allocation2 + $0x40] sm:$0xf]  ;;  %v3086_v25 = vld [vmem:[#allocation2 + $0x30] sm:$0xe] }
 0x161   : > { %4134 = vmatprep.mubr.msk.bf16.mxu1 %vm884_vm7, %v4318_v54  ;;  %v3128_v4 = vrot.slane %v5063_v40, 5  ;;  %v2318_v13 = vrot.slane %v4934_v43, 5  ;;  %v5088_v54 = vsel %vm4614_vm10, %v3879_v12, %v3118_v61  ;;  %v2325_v35 = vrot.slane %v4947_v55, 5  ;;  %v5111_v59 = vld [vmem:[#allocation2 + $0x4c] sm:$0xf]  ;;  %v4327_v7 = vld [vmem:[#allocation2 + $0x60] sm:$0xff]  }
 0x162   : > { %v3888_v43 = vcombine.low %v5088_v54, %v5073_v62  ;;  %v5104_v61 = vsel %vm4614_vm10, %v2313_v19, %v2314_v8  ;;  %v3139_v56 = vrot.slane %v5083_v17, 5  ;;  %v3881_v3 = vrot.slane %v3086_v25, 9  ;;  %v2255_v63 = vld [vmem:[#allocation2 + $0x54] sm:$0xe]  ;;  %v2702_v8 = vld [vmem:[#allocation2 + $0x18] sm:$0xf] }
 0x163   : > { %v3146_v12 = vrot.slane %v5111_v59, 5 }
 0x165   : > { %4181 = vmatmul.mubr.msk.bf16.vlgmr.msra.gmra.mxu0 %vm884_vm7, %v4319_v23  ;;  %v5092_v23 = vsel %vm4614_vm10, %v3823_v2, %v2304_v29  ;;  %v2254_v29 = vld [vmem:[#allocation2 + $0x48] sm:$0xe]  ;;  %v2327_v2 = vrot.slane %v2325_v35, 4 }
 0x166   : > { %4184 = vmatprep.mubr.msk.bf16.mxu0 %vm884_vm7, %v4320_v26  ;;  %4215 = vmatpush3.bf16.msra.mxu0 %v3223_v45  ;;  %v3824_v45 = vrot.slane %v2253_v47, 9  ;;  %v3880_v26 = vrot.slane %v3085_v49, 9  ;;  %v3832_v57 = vcombine.low %v5092_v23, %v5078_v21  ;;  %v2320_v47 = vrot.slane %v2318_v13, 4 }
 0x167   : > { %v3825_v49 = vrot.slane %v2254_v29, 9 }
 0x168   : > { %4135 = vmatmul.mubr.msk.bf16.gmra.mxu1 %vm884_vm7, %v4321_v27  ;;  %v5094_v27 = vld [vmem:[#allocation2 + $0x38] sm:$0x1]  ;;  %v5117_v10 = vsel %vm4614_vm10, %v3824_v45, %v2311_v36  ;;  %v2740_v45 = vshrl.u32 %v5046_v30, 16  ;;  %v3088_v36 = vld [vmem:[#allocation2 + $0x48] sm:$0xe] }
 0x169   : > { %4138 = vmatprep.mubr.msk.bf16.mxu1 %vm884_vm7, %v4322_v46  ;;  %v5108_v46 = vsel %vm4614_vm10, %v3127_v44, %v3128_v4  ;;  %v3135_v55 = vrot.slane %v5094_v27, 5  ;;  %v3833_v19 = vcombine.low %v5117_v10, %v5104_v61  ;;  %v5129_v44 = vld [vmem:[#allocation2 + $0x44] sm:$0x1]  ;;  %v2736_v4 = vshll.u32 %v5046_v30, 16 }
 0x16a   : > { %v5147_v29 = vsel %vm4614_vm10, %v3825_v49, %v2318_v13  ;;  %v3142_v13 = vrot.slane %v5129_v44, 5  ;;  %v2256_v49 = vld [vmem:[#allocation2 + $0x60] sm:$0xe]  ;;  %v2788_v61 = vshrl.u32 %v5060_v58, 16 }
 0x16b   : > { %v5177_v60 = vrot.slane %v2736_v4, 5  ;;  %v3827_v4 = vrot.slane %v2256_v49, 9 }
 0x16d   : > { %4185 = vmatmul.mubr.msk.bf16.gmra.mxu0 %vm884_vm7, %v4323_v6  ;;  %v4326_v6 = vld [vmem:[#allocation2 + $0x54] sm:$0xff]  }
 0x16e   : > { %4188 = vmatprep.mubr.msk.bf16.mxu0 %vm884_vm7, %v4324_v34  ;;  %v5122_v34 = vsel %vm4614_vm10, %v3880_v26, %v3125_v31  ;;  %v2321_v31 = vrot.slane %v4939_v53, 5  ;;  %v5139_v26 = vsel %vm4614_vm10, %v3881_v3, %v3132_v0  ;;  %v3141_v53 = vrot.slane %v3139_v56, 4 }
 0x170   : > { %4139 = vmatmul.mubr.msk.bf16.gmra.mxu1 %vm884_vm7, %v4325_v50  ;;  %v3087_v50 = vld [vmem:[#allocation2 + $0x3c] sm:$0xe]  ;;  %v5153_v30 = vsel %vm4614_vm10, %v2320_v47, %v2321_v31  ;;  %v2727_v47 = vshrl.u32 %v2702_v8, 16  ;;  %v2730_v31 = vshll.u32 %v2702_v8, 16  ;;  %v5187_v5 = vsel %vm4614_vm10, %v3141_v53, %v3142_v13  ;;  %v5205_v13 = vld [vmem:[#allocation2 + $0x64] sm:$0xf] }
 0x171   : > { %4162 = vmatprep.mubr.msk.bf16.mxu1 %vm884_vm7, %v3829_v38  ;;  %v3134_v38 = vrot.slane %v3132_v0, 4  ;;  %v2328_v0 = vrot.slane %v4955_v1, 5  ;;  %v3882_v3 = vrot.slane %v3087_v50, 9  ;;  %v4328_v50 = vld [vmem:[#allocation2 + $0x6c] sm:$0xff]   ;;  %v3883_v8 = vrot.slane %v3088_v36, 9 }
 0x172   : > { %v3160_v49 = vrot.slane %v5205_v13, 5  ;;  %v3089_v1 = vld [vmem:[#allocation2 + $0x54] sm:$0xe] }
 0x173   : > { %v5143_v25 = vsel %vm4614_vm10, %v3134_v38, %v3135_v55  ;;  %v5159_v38 = vld [vmem:[%s5767_s3] sm:$0x3]  ;;  %v3148_v55 = vrot.slane %v3146_v12, 4  ;;  %v5175_v15 = vsel %vm4614_vm10, %v2327_v2, %v2328_v0  ;;  %v5196_v2 = vsel %vm4614_vm10, %v3882_v3, %v3139_v56 }
 0x174   : > { %v2732_v0 = vrot.slane %v2730_v31, 5  ;;  %v3090_v3 = vld [vmem:[#allocation2 + $0x60] sm:$0xe]  ;;  %v5222_v31 = vld [vmem:[#allocation2 + $0x68] sm:$0x1] }
 0x175   : > { %4189 = vmatmul.mubr.msk.bf16.gmra.mxu0 %vm884_vm7, %v4326_v6  ;;  %v5149_v6 = vld [vmem:[#allocation2 + $0x50] sm:$0x1] }
 0x176   : > { %4192 = vmatprep.mubr.msk.bf16.mxu0 %vm884_vm7, %v4327_v7  ;;  %v3826_v7 = vrot.slane %v2255_v63, 9  ;;  %v3149_v14 = vrot.slane %v5149_v6, 5 }
 0x178   : > { %4163 = vmatmul.mubr.msk.bf16.vlgmr.msra.gmra.mxu1 %vm884_vm7, %v3830_v22  ;;  %v2742_v22 = vrot.slane %v2740_v45, 4  ;;  %v5203_v53 = vsel %vm4614_vm10, %v3148_v55, %v3149_v14  ;;  %v2705_v45 = vld [vmem:[#allocation2 + $0x24] sm:$0xf]  ;;  %v5219_v55 = vsel %vm4614_vm10, %v3883_v8, %v3146_v12  ;;  %v2764_v14 = vshrl.u32 %v5051_v24, 16  ;;  %v2708_v12 = vld [vmem:[#allocation2 + $0x30] sm:$0xf] }
 0x179   : > { %4197 = vmatpush3.bf16.msra.mxu1 %v5067_v41  ;;  %4166 = vmatprep.mubr.msk.bf16.mxu1 %vm884_vm7, %v3831_v20  ;;  %v5183_v41 = vsel %vm4614_vm10, %v3826_v7, %v2325_v35  ;;  %v5190_v20 = vld [vmem:[#allocation2 + $0x58] sm:$0xf]  ;;  %v2332_v35 = vrot.slane %v4963_v9, 5  ;;  %v2729_v7 = vrot.slane %v2727_v47, 4  ;;  %v2335_v47 = vrot.slane %v4966_v48, 5 }
 0x17a   : > { %4263 = vmatprep.subr.msk.bf16.mxu1 %vm909_vm2, %v5159_v38  ;;  %v2743_v36 = vor.u32 %v2742_v22, %v5177_v60  ;;  %v3153_v9 = vrot.slane %v5190_v20, 5  ;;  %v2760_v22 = vshll.u32 %v5051_v24, 16  ;;  %v5237_v8 = vld [vmem:[#allocation2 + $0x5c] sm:$0x1]  ;;  %v3885_v24 = vrot.slane %v3090_v3, 9 }
 0x17b   : > { %v5230_v62 = vsel %vm4614_vm10, %v3827_v4, %v2332_v35  ;;  %v2334_v54 = vrot.slane %v2332_v35, 4  ;;  %v2733_v48 = vor.u32 %v2732_v0, %v2729_v7  ;;  %v2751_v56 = vshrl.u32 %v2705_v45, 16 }
 0x17c   : > { %v2754_v63 = vshll.u32 %v2705_v45, 16  ;;  %v2744_v4 = vrot.slane %v2743_v36, 4  ;;  %v3155_v35 = vrot.slane %v3153_v9, 4  ;;  %v5244_v21 = vrot.slane %v2760_v22, 5 }
 0x17d   : > { %4193 = vmatmul.mubr.msk.bf16.gmra.mxu0 %vm884_vm7, %v4328_v50  ;;  %v3163_v50 = vrot.slane %v5222_v31, 5  ;;  %v2766_v23 = vrot.slane %v2764_v14, 4  ;;  %v2778_v7 = vshll.u32 %v2708_v12, 16  ;;  %v3156_v3 = vrot.slane %v5237_v8, 5 }
 0x17e   : > { %4216 = vmatprep.mubr.msk.bf16.mxu0 %vm884_vm7, %v3888_v43  ;;  %v2746_v43 = vshll.u32 %v5056_v32, 16  ;;  %v3162_v32 = vrot.slane %v3160_v49, 4  ;;  %v2784_v45 = vshll.u32 %v5060_v58, 16  ;;  %v2336_v10 = vsel %vm4614_vm10, %v2334_v54, %v2335_v47 }
 0x17f   : > { %v2753_v36 = vrot.slane %v2751_v56, 4  ;;  %v2756_v28 = vrot.slane %v2754_v63, 5  ;;  %v5782_v22 = vcombine.low %v5122_v34, %v5108_v46  ;;  %v5263_v58 = vsel %vm4614_vm10, %v3885_v24, %v3160_v49 }
 0x180   : > { %4167 = vmatmul.mubr.msk.bf16.gmra.mxu1 %vm884_vm7, %v3832_v57  ;;  %v2775_v57 = vshrl.u32 %v2708_v12, 16  ;;  %v2748_v0 = vrot.slane %v2746_v43, 5  ;;  %v3884_v43 = vrot.slane %v3089_v1, 9  ;;  %v5259_v12 = vsel %vm4614_vm10, %v3155_v35, %v3156_v3 }
 0x181   : > { %4170 = vmatprep.mubr.msk.bf16.mxu1 %vm884_vm7, %v3833_v19  ;;  %v2734_v19 = vrot.slane %v2733_v48, 4  ;;  %v5783_v63 = vcombine.low %v5139_v26, %v5143_v25  ;;  %v5271_v46 = vsel %vm4614_vm10, %v3162_v32, %v3163_v50  ;;  %v2767_v34 = vor.u32 %v2766_v23, %v5244_v21 }
 0x182   : > { %v2749_v14 = vsel %vm4740_vm14, %v2744_v4, %v2748_v0  ;;  %v2777_v1 = vrot.slane %v2775_v57, 4  ;;  %v2780_v56 = vrot.slane %v2778_v7, 5  ;;  %v3836_v47 = vcombine.low %v5230_v62, %v2336_v10  ;;  %v5303_v0 = vld [vmem:[#allocation2 + $0x70] sm:$0xf] }
 0x183   : > { %v5277_v54 = vsel %vm4614_vm10, %v3884_v43, %v3153_v9  ;;  %v5279_v49 = vrot.slane %v2784_v45, 5  ;;  %v2790_v48 = vrot.slane %v2788_v61, 4  ;;  %v5784_v26 = vcombine.low %v5147_v29, %v5153_v30  ;;  %v2711_v9 = vld [vmem:[#allocation2 + $0x3c] sm:$0xf]  ;;  %v3091_v30 = vld [vmem:[#allocation2 + $0x6c] sm:$0xe] }
 0x184   : > { %v2739_v25 = vsel %vm4740_vm14, %v2734_v19, %v5177_v60  ;;  %v3893_v50 = vcombine.low %v5277_v54, %v5259_v12  ;;  %v2757_v62 = vor.u32 %v2756_v28, %v2753_v36  ;;  %v2770_v24 = vshll.u32 %v5063_v40, 16  ;;  %v2714_v28 = vld [vmem:[#allocation2 + $0x48] sm:$0xf] }
 0x185   : > { %4217 = vmatmul.mubr.msk.bf16.vlgmr.msra.gmra.mxu0 %vm884_vm7, %v5782_v22  ;;  %v5785_v4 = vcombine.low %v5183_v41, %v5175_v15  ;;  %v3863_v35 = vcombine.low %v2739_v25, %v2749_v14  ;;  %v3894_v29 = vcombine.low %v5263_v58, %v5271_v46  ;;  %v2808_v32 = vshll.u32 %v5083_v17, 16  ;;  %v5310_v22 = vld [vmem:[#allocation2 + $0x74] sm:$0x1] }
 0x186   : > { %4220 = vmatprep.mubr.msk.bf16.mxu0 %vm884_vm7, %v5783_v63  ;;  %v2812_v60 = vshrl.u32 %v5083_v17, 16  ;;  %v2768_v23 = vrot.slane %v2767_v34, 4  ;;  %v2781_v57 = vor.u32 %v2780_v56, %v2777_v1  ;;  %v2832_v40 = vshll.u32 %v5111_v59, 16 }
 0x187   : > { %v2836_v7 = vshrl.u32 %v5111_v59, 16  ;;  %v2791_v15 = vor.u32 %v2790_v48, %v5279_v49  ;;  %v2794_v41 = vshll.u32 %v5094_v27, 16  ;;  %v2799_v3 = vshrl.u32 %v2711_v9, 16 }
 0x188   : > { %4171 = vmatmul.mubr.msk.bf16.gmra.mxu1 %vm884_vm7, %v5784_v26  ;;  %v2802_v45 = vshll.u32 %v2711_v9, 16  ;;  %v2758_v61 = vrot.slane %v2757_v62, 4  ;;  %v2772_v10 = vrot.slane %v2770_v24, 5  ;;  %v3886_v19 = vrot.slane %v3091_v30, 9  ;;  %v2720_v30 = vld [vmem:[#allocation2 + $0x60] sm:$0xf] }
 0x189   : > { %4174 = vmatprep.mubr.msk.bf16.mxu1 %vm884_vm7, %v5785_v4  ;;  %v3167_v17 = vrot.slane %v5303_v0, 5  ;;  %v5786_v36 = vcombine.low %v5196_v2, %v5187_v5  ;;  %v5312_v59 = vrot.slane %v2808_v32, 5  ;;  %v2814_v14 = vrot.slane %v2812_v60, 4  ;;  %v2717_v32 = vld [vmem:[#allocation2 + $0x54] sm:$0xf] }
 0x18a   : > { %v2823_v27 = vshrl.u32 %v2714_v28, 16  ;;  %v2826_v43 = vshll.u32 %v2714_v28, 16  ;;  %v5787_v58 = vcombine.low %v5219_v55, %v5203_v53  ;;  %v2773_v63 = vsel %vm4740_vm14, %v2768_v23, %v2772_v10 }
 0x18b   : > { %v2782_v46 = vrot.slane %v2781_v57, 4  ;;  %v5320_v34 = vrot.slane %v2832_v40, 5  ;;  %v2838_v5 = vrot.slane %v2836_v7, 4  ;;  %v2792_v2 = vrot.slane %v2791_v15, 4 }
 0x18c   : > { %v2796_v1 = vrot.slane %v2794_v41, 5  ;;  %v2801_v56 = vrot.slane %v2799_v3, 4  ;;  %v2804_v48 = vrot.slane %v2802_v45, 5  ;;  %v2763_v26 = vsel %vm4740_vm14, %v2758_v61, %v5244_v21 }
 0x18d   : > { %4221 = vmatmul.mubr.msk.bf16.gmra.mxu0 %vm884_vm7, %v5786_v36  ;;  %v3168_v53 = vsel %vm4614_vm10, %v3886_v19, %v3167_v17  ;;  %v3169_v55 = vrot.slane %v3167_v17, 4  ;;  %v3170_v25 = vrot.slane %v5310_v22, 5  ;;  %v3864_v62 = vcombine.low %v2763_v26, %v2773_v63 }
 0x18e   : > { %4224 = vmatprep.mubr.msk.bf16.mxu0 %vm884_vm7, %v5787_v58  ;;  %v2815_v24 = vor.u32 %v2814_v14, %v5312_v59  ;;  %v2825_v9 = vrot.slane %v2823_v27, 4  ;;  %v2828_v4 = vrot.slane %v2826_v43, 5  ;;  %v2839_v21 = vor.u32 %v2838_v5, %v5320_v34  ;;  %v2723_v43 = vld [vmem:[#allocation2 + $0x6c] sm:$0xf] }
 0x18f   : > { %v2856_v60 = vshll.u32 %v5190_v20, 16  ;;  %v2860_v23 = vshrl.u32 %v5190_v20, 16  ;;  %v2805_v57 = vor.u32 %v2804_v48, %v2801_v56  ;;  %v2818_v28 = vshll.u32 %v5129_v44, 16 }
 0x190   : > { %4175 = vmatmul.mubr.msk.bf16.gmra.mxu1 %vm884_vm7, %v3836_v47  ;;  %v2787_v47 = vsel %vm4740_vm14, %v2782_v46, %v5279_v49  ;;  %v2842_v40 = vshll.u32 %v5149_v6, 16  ;;  %v2871_v7 = vshrl.u32 %v2720_v30, 16  ;;  %v2874_v15 = vshll.u32 %v2720_v30, 16 }
 0x191   : > { %4198 = vmatprep.mubr.msk.bf16.mxu1 %vm884_vm7, %v3863_v35  ;;  %v2797_v35 = vsel %vm4740_vm14, %v2792_v2, %v2796_v1  ;;  %v2880_v41 = vshll.u32 %v5205_v13, 16  ;;  %v2884_v49 = vshrl.u32 %v5205_v13, 16  ;;  %v2816_v20 = vrot.slane %v2815_v24, 4 }
 0x192   : > { %v2829_v3 = vor.u32 %v2828_v4, %v2825_v9  ;;  %v2847_v45 = vshrl.u32 %v2717_v32, 16  ;;  %v2850_v61 = vshll.u32 %v2717_v32, 16  ;;  %v2840_v44 = vrot.slane %v2839_v21, 4 }
 0x193   : > { %v2858_v10 = vrot.slane %v2856_v60, 5  ;;  %v2862_v6 = vrot.slane %v2860_v23, 4  ;;  %v3363_v19 = vsel %vm909_vm2, %v5159_v38, 0  ;;  %v3865_v17 = vcombine.low %v2787_v47, %v2797_v35 }
 0x194   : > { %v3171_v13 = vsel %vm4614_vm10, %v3169_v55, %v3170_v25  ;;  %v2820_v36 = vrot.slane %v2818_v28, 5  ;;  %v2844_v12 = vrot.slane %v2842_v40, 5  ;;  %v2873_v54 = vrot.slane %v2871_v7, 4 }
 0x195   : > { %4225 = vmatmul.mubr.msk.bf16.gmra.mxu0 %vm884_vm7, %v3893_v50  ;;  %v2876_v50 = vrot.slane %v2874_v15, 5  ;;  %v2882_v14 = vrot.slane %v2880_v41, 5  ;;  %v2886_v27 = vrot.slane %v2884_v49, 4  ;;  %v2830_v58 = vrot.slane %v2829_v3, 4 }
 0x196   : > { %4228 = vmatprep.mubr.msk.bf16.mxu0 %vm884_vm7, %v3894_v29  ;;  %v2806_v29 = vrot.slane %v2805_v57, 4  ;;  %v2849_v63 = vrot.slane %v2847_v45, 4  ;;  %v2852_v46 = vrot.slane %v2850_v61, 5  ;;  %v3895_v38 = vcombine.low %v3168_v53, %v3171_v13 }
 0x197   : > { %v2821_v16 = vsel %vm4740_vm14, %v2816_v20, %v2820_v36  ;;  %v2845_v5 = vsel %vm4740_vm14, %v2840_v44, %v2844_v12  ;;  %v2863_v2 = vor.u32 %v2862_v6, %v2858_v10  ;;  %v2895_v1 = vshrl.u32 %v2723_v43, 16 }
 0x198   : > { %4199 = vmatmul.mubr.msk.bf16.vlgmr.msra.gmra.mxu1 %vm884_vm7, %v3864_v62  ;;  %v2898_v56 = vshll.u32 %v2723_v43, 16  ;;  %v2904_v48 = vshll.u32 %v5303_v0, 16  ;;  %v2908_v26 = vshrl.u32 %v5303_v0, 16  ;;  %v2877_v55 = vor.u32 %v2876_v50, %v2873_v54 }
 0x199   : > { %4202 = vmatprep.mubr.msk.bf16.mxu1 %vm884_vm7, %v3865_v17  ;;  %4233 = vmatpush3.bf16.msra.mxu1 %v3363_v19  ;;  %v2887_v25 = vor.u32 %v2886_v27, %v2882_v14  ;;  %v2890_v62 = vshll.u32 %v5222_v31, 16  ;;  %v2811_v53 = vsel %vm4740_vm14, %v2806_v29, %v5312_v59  ;;  %v2835_v24 = vsel %vm4740_vm14, %v2830_v58, %v5320_v34 }
 0x19a   : > { %v2853_v9 = vor.u32 %v2852_v46, %v2849_v63  ;;  %v2866_v4 = vshll.u32 %v5237_v8, 16  ;;  %v3866_v30 = vcombine.low %v2811_v53, %v2821_v16  ;;  %v3867_v47 = vcombine.low %v2835_v24, %v2845_v5  ;;  %v5788_v63 = vld [vmem:[#allocation3_spill] sm:$0xff] }
 0x19b   : > { %v2864_v0 = vrot.slane %v2863_v2, 4  ;;  %v2897_v21 = vrot.slane %v2895_v1, 4  ;;  %v2900_v32 = vrot.slane %v2898_v56, 5  ;;  %v2906_v60 = vrot.slane %v2904_v48, 5  ;;  %v5414_v2 = vld [vmem:[%s5770_s6] ss:$0 sm:$0xff] }
 0x19c   : > { %v2910_v31 = vrot.slane %v2908_v26, 4  ;;  %v2878_v23 = vrot.slane %v2877_v55, 4  ;;  %v2888_v35 = vrot.slane %v2887_v25, 4  ;;  %v2892_v57 = vrot.slane %v2890_v62, 5 }
 0x19d   : > { %4229 = vmatmul.mubr.msk.bf16.gmra.mxu0 %vm884_vm7, %v3895_v38  ;;  %v2854_v59 = vrot.slane %v2853_v9, 4  ;;  %v2868_v28 = vrot.slane %v2866_v4, 5  ;;  %v2901_v8 = vor.u32 %v2900_v32, %v2897_v21  ;;  %v2914_v7 = vshll.u32 %v5310_v22, 16 }
 0x19e   : > { %v2911_v40 = vor.u32 %v2910_v31, %v2906_v60  ;;  %v2883_v15 = vsel %vm4740_vm14, %v2878_v23, %v2882_v14  ;;  %v2893_v41 = vsel %vm4740_vm14, %v2888_v35, %v2892_v57 }
 0x19f   : > { %v2869_v34 = vsel %vm4740_vm14, %v2864_v0, %v2868_v28  ;;  %v2859_v49 = vsel %vm4740_vm14, %v2854_v59, %v2858_v10  ;;  %v3869_v3 = vcombine.low %v2883_v15, %v2893_v41  ;;  %v2902_v45 = vrot.slane %v2901_v8, 4 }
 0x1a0   : > { %4203 = vmatmul.mubr.msk.bf16.gmra.mxu1 %vm884_vm7, %v3866_v30  ;;  %v3868_v20 = vcombine.low %v2859_v49, %v2869_v34  ;;  %v2912_v61 = vrot.slane %v2911_v40, 4  ;;  %v2916_v44 = vrot.slane %v2914_v7, 5 }
 0x1a1   : > { %4206 = vmatprep.mubr.msk.bf16.mxu1 %vm884_vm7, %v3867_v47  ;;  %v2907_v22 = vsel %vm4740_vm14, %v2902_v45, %v2906_v60 }
 0x1a2   : > { %v2917_v6 = vsel %vm4740_vm14, %v2912_v61, %v2916_v44 }
 0x1a3   : > { %v3870_v19 = vcombine.low %v2907_v22, %v2917_v6 }
 0x1a8   : > { %4207 = vmatmul.mubr.msk.bf16.gmra.mxu1 %vm884_vm7, %v3868_v20 }
 0x1a9   : > { %4210 = vmatprep.mubr.msk.bf16.mxu1 %vm884_vm7, %v3869_v3 }
 0x1b0   : > { %4211 = vmatmul.mubr.msk.bf16.gmra.mxu1 %vm884_vm7, %v3870_v19 }
 0x1b1   : > { %4234 = vmatprep.mubr.msk.bf16.mxu1 %vm884_vm7, %v4840_v52 }
 0x1b5   : > { %v4074_v10 = vpop.f32.mrf.mxu0 }
 0x1b6   : > { %v1012_v48 = vadd.f32 %v4074_v10, %v5414_v2 }
 0x1b7   : > { %v947_v17 = vpop.f32.mrf.mxu0 }
 0x1b8   : > { %4235 = vmatmul.mubr.msk.bf16.vlgmr.msra.gmra.mxu1 %vm884_vm7, %v4878_v33  ;;  %v1010_v55 = vadd.f32 %v5414_v2, %v947_v17 }
 0x1b9   : > { %4238 = vmatprep.mubr.msk.bf16.mxu1 %vm884_vm7, %v4895_v37  ;;  %v4075_v13 = vpop.f32.mrf.mxu0 }
 0x1ba   : > { %v1013_v24 = vadd.f32 %v4075_v13, %v5414_v2 }
 0x1bb   : > { %v950_v12 = vpop.f32.mrf.mxu0 }
 0x1bc   : > { %v1011_v47 = vadd.f32 %v5414_v2, %v950_v12 }
 0x1bd   : > { %v4078_v36 = vpop.f32.mrf.mxu1 }
 0x1be   : > { %v1016_v28 = vadd.f32 %v4078_v36, %v5414_v2 }
 0x1bf   : > { %v963_v42 = vpop.f32.mrf.mxu1 }
 0x1c0   : > { %4239 = vmatmul.mubr.msk.bf16.gmra.mxu1 %vm884_vm7, %v4932_v39  ;;  %v1014_v40 = vadd.f32 %v5414_v2, %v963_v42 }
 0x1c1   : > { %4242 = vmatprep.mubr.msk.bf16.mxu1 %vm884_vm7, %v4949_v18  ;;  %v4079_v54 = vpop.f32.mrf.mxu1 }
 0x1c2   : > { %v1017_v41 = vadd.f32 %v4079_v54, %v5414_v2 }
 0x1c3   : > { %v966_v52 = vpop.f32.mrf.mxu1 }
 0x1c4   : > { %v1015_v61 = vadd.f32 %v5414_v2, %v966_v52 }
 0x1c6   : > { %v4110_v50 = vpop.f32.mrf.mxu0  ;;  %v4082_v14 = vpop.f32.mrf.mxu1 }
 0x1c7   : > { %v1020_v42 = vadd.f32 %v4082_v14, %v5414_v2 }
 0x1c8   : > { %4243 = vmatmul.mubr.msk.bf16.gmra.mxu1 %vm884_vm7, %v4977_v51  ;;  %v1589_v33 = vpop.f32.mrf.mxu0  ;;  %v979_v37 = vpop.f32.mrf.mxu1 }
 0x1c9   : > { %4246 = vmatprep.mubr.msk.bf16.mxu1 %vm884_vm7, %v4988_v11  ;;  %v1018_v52 = vadd.f32 %v5414_v2, %v979_v37 }
 0x1ca   : > { %v4111_v27 = vpop.f32.mrf.mxu0  ;;  %v4083_v43 = vpop.f32.mrf.mxu1 }
 0x1cc   : > { %v1592_v39 = vpop.f32.mrf.mxu0  ;;  %v5401_v29 = vpop.f32.mrf.mxu1 }
 0x1ce   : > { %v4114_v18 = vpop.f32.mrf.mxu0  ;;  %v5403_v58 = vpop.f32.mrf.mxu1 }
 0x1d0   : > { %4247 = vmatmul.mubr.msk.bf16.gmra.mxu1 %vm884_vm7, %v5788_v63  ;;  %v1605_v46 = vpop.f32.mrf.mxu0  ;;  %v5407_v38 = vpop.f32.mrf.mxu1 }
 0x1d2   : > { %v4115_v51 = vpop.f32.mrf.mxu0  ;;  %v5409_v5 = vpop.f32.mrf.mxu1 }
 0x1d4   : > { %v1608_v16 = vpop.f32.mrf.mxu0  ;;  %v5416_v1 = vpop.f32.mrf.mxu1 }
 0x1d6   : > { %v4118_v11 = vpop.f32.mrf.mxu0 }
 0x1d8   : > { %v1621_v56 = vpop.f32.mrf.mxu0 }
 0x1da   : > { %v4119_v62 = vpop.f32.mrf.mxu0 }
 0x1dc   : > { %v1624_v32 = vpop.f32.mrf.mxu0 }
 0x1dd   : > { %v4092_v26 = vpop.f32.mrf.mxu1 }
 0x1de   : > { %v1397_v25 = vadd.f32 %v4092_v26, %v1012_v48  ;;  %v4122_v57 = vpop.f32.mrf.mxu0 }
 0x1df   : > { %v1332_v53 = vpop.f32.mrf.mxu1 }
 0x1e0   : > { %v1395_v9 = vadd.f32 %v1332_v53, %v1010_v55  ;;  %v5421_v4 = vadd.f32 %v4110_v50, %v1397_v25  ;;  %v1637_v59 = vpop.f32.mrf.mxu0 }
 0x1e1   : > { %v4093_v30 = vpop.f32.mrf.mxu1 }
 0x1e2   : > { %v1398_v0 = vadd.f32 %v4093_v30, %v1013_v24  ;;  %v5424_v21 = vadd.f32 %v1589_v33, %v1395_v9  ;;  %v4123_v34 = vpop.f32.mrf.mxu0 }
 0x1e3   : > { %v1335_v60 = vpop.f32.mrf.mxu1 }
 0x1e4   : > { %v1396_v31 = vadd.f32 %v1335_v60, %v1011_v47  ;;  %v5426_v23 = vadd.f32 %v4111_v27, %v1398_v0  ;;  %v1640_v3 = vpop.f32.mrf.mxu0  ;;  %v1021_v27 = vadd.f32 %v4083_v43, %v5414_v2  ;;  %v1023_v60 = vadd.f32 %v5414_v2, %v5416_v1 }
 0x1e6   : > { %v5428_v35 = vadd.f32 %v1592_v39, %v1396_v31 }
 0x1ee   : > { %v4096_v8 = vpop.f32.mrf.mxu1 }
 0x1ef   : > { %v1401_v7 = vadd.f32 %v4096_v8, %v1016_v28 }
 0x1f0   : > { %v1348_v15 = vpop.f32.mrf.mxu1 }
 0x1f1   : > { %v1399_v49 = vadd.f32 %v1348_v15, %v1014_v40  ;;  %v5433_v20 = vadd.f32 %v4114_v18, %v1401_v7 }
 0x1f2   : > { %v4097_v45 = vpop.f32.mrf.mxu1 }
 0x1f3   : > { %v1402_v44 = vadd.f32 %v4097_v45, %v1017_v41  ;;  %v5436_v22 = vadd.f32 %v1605_v46, %v1399_v49 }
 0x1f4   : > { %v1351_v6 = vpop.f32.mrf.mxu1 }
 0x1f5   : > { %v1400_v19 = vadd.f32 %v1351_v6, %v1015_v61  ;;  %v5438_v10 = vadd.f32 %v4115_v51, %v1402_v44  ;;  %v1019_v51 = vadd.f32 %v5414_v2, %v5401_v29  ;;  %v1022_v29 = vadd.f32 %v5414_v2, %v5407_v38 }
 0x1f7   : > { %v5440_v17 = vpop.f32.mrf.mxu0  ;;  %v5442_v13 = vadd.f32 %v1608_v16, %v1400_v19 }
 0x1f9   : > { %v5444_v36 = vpop.f32.mrf.mxu0 }
 0x1fb   : > { %v5447_v12 = vpop.f32.mrf.mxu0 }
 0x1fd   : > { %v5451_v39 = vpop.f32.mrf.mxu0 }
 0x200   : > { %v4100_v54 = vpop.f32.mrf.mxu1 }
 0x201   : > { %v1405_v50 = vadd.f32 %v4100_v54, %v1020_v42 }
 0x202   : > { %v1364_v33 = vpop.f32.mrf.mxu1 }
 0x203   : > { %v1403_v18 = vadd.f32 %v1364_v33, %v1018_v52  ;;  %v5453_v63 = vadd.f32 %v4118_v11, %v1405_v50  ;;  %v1024_v11 = vadd.f32 %v5403_v58, %v5414_v2 }
 0x204   : > { %v4101_v46 = vpop.f32.mrf.mxu1 }
 0x205   : > { %v1406_v16 = vadd.f32 %v4101_v46, %v1021_v27  ;;  %v5457_v14 = vadd.f32 %v1621_v56, %v1403_v18 }
 0x206   : > { %v1367_v48 = vpop.f32.mrf.mxu1 }
 0x207   : > { %v5459_v26 = vpop.f32.mrf.mxu0  ;;  %v1404_v37 = vadd.f32 %v1367_v48, %v1019_v51  ;;  %v5461_v55 = vadd.f32 %v4119_v62, %v1406_v16  ;;  %v1025_v62 = vadd.f32 %v5409_v5, %v5414_v2 }
 0x209   : > { %v5463_v25 = vadd.f32 %v1624_v32, %v1404_v37  ;;  %v5465_v43 = vpop.f32.mrf.mxu0 }
 0x20b   : > { %v5467_v53 = vpop.f32.mrf.mxu0 }
 0x20d   : > { %v5473_v56 = vpop.f32.mrf.mxu0 }
 0x210   : > { %v4104_v24 = vpop.f32.mrf.mxu1 }
 0x211   : > { %v1409_v9 = vadd.f32 %v4104_v24, %v1024_v11 }
 0x212   : > { %v1380_v30 = vpop.f32.mrf.mxu1 }
 0x213   : > { %v1407_v47 = vadd.f32 %v1380_v30, %v1022_v29  ;;  %v5477_v0 = vadd.f32 %v4122_v57, %v1409_v9 }
 0x214   : > { %v4105_v32 = vpop.f32.mrf.mxu1 }
 0x215   : > { %5789 = vst [vmem:[#allocation3_spill] sm:$0xff] %v5477_v0  ;;  %v5481_v31 = vpop.f32.mrf.mxu0  ;;  %v1410_v58 = vadd.f32 %v4105_v32, %v1025_v62  ;;  %v5483_v28 = vadd.f32 %v1637_v59, %v1407_v47 }
 0x216   : > { %v1383_v38 = vpop.f32.mrf.mxu1 }
 0x217   : > { %5790 = vst [vmem:[#allocation4_spill] sm:$0xff] %v5483_v28  ;;  %v5485_v8 = vpop.f32.mrf.mxu0  ;;  %v1408_v40 = vadd.f32 %v1383_v38, %v1023_v60  ;;  %v5487_v7 = vadd.f32 %v4123_v34, %v1410_v58 }
 0x218   : > { %v4128_v15 = vpop.f32.mrf.mxu1 }
 0x219   : > { %5791 = vst [vmem:[#allocation5_spill] sm:$0xff] %v5487_v7  ;;  %v5489_v5 = vpop.f32.mrf.mxu0  ;;  %v5491_v57 = vadd.f32 %v1640_v3, %v1408_v40 }
 0x21a   : > { %5792 = vst [vmem:[#allocation6_spill] sm:$0xff] %v5489_v5  ;;  %v1788_v41 = vpop.f32.mrf.mxu1 }
 0x21b   : > { %5793 = vst [vmem:[#allocation7_spill] sm:$0xff] %v5491_v57  ;;  %v5493_v49 = vpop.f32.mrf.mxu0 }
 0x21c   : > { %5794 = vst [vmem:[#allocation8_spill] sm:$0xff] %v5493_v49  ;;  %v4129_v2 = vpop.f32.mrf.mxu1 }
 0x21d   : > { %v5495_v1 = vpop.f32.mrf.mxu0  ;;  %v1854_v0 = vadd.f32 %v4129_v2, %v5426_v23 }
 0x21e   : > { %5795 = vst [vmem:[#allocation9_spill] sm:$0xff] %v5495_v1  ;;  %v1791_v45 = vpop.f32.mrf.mxu1 }
 0x21f   : > { %v5497_v59 = vpop.f32.mrf.mxu0 }
 0x220   : > { %5796 = vst [vmem:[#allocation10_spill] sm:$0xff] %v5497_v59  ;;  %v4132_v61 = vpop.f32.mrf.mxu1 }
 0x221   : > { %v5499_v44 = vpop.f32.mrf.mxu0 }
 0x222   : > { %5797 = vst [vmem:[#allocation11_spill] sm:$0xff] %v5499_v44  ;;  %v1804_v6 = vpop.f32.mrf.mxu1 }
 0x223   : > { %v5501_v34 = vpop.f32.mrf.mxu0  ;;  %v1855_v23 = vadd.f32 %v1804_v6, %v5436_v22 }
 0x224   : > { %5798 = vst [vmem:[#allocation12_spill] sm:$0xff] %v5501_v34  ;;  %v5503_v19 = vpop.f32.mrf.mxu1 }
 0x225   : > { %v4182_v42 = vpop.f32.mrf.mxu0  ;;  %v2237_v6 = vadd.f32 %v5465_v43, %v1855_v23 }
 0x226   : > { %v5505_v3 = vpop.f32.mrf.mxu1 }
 0x227   : > { %v5507_v54 = vpop.f32.mrf.mxu0  ;;  %v1856_v22 = vadd.f32 %v5505_v3, %v5442_v13 }
 0x228   : > { %v5509_v52 = vpop.f32.mrf.mxu1 }
 0x229   : > { %v5511_v50 = vpop.f32.mrf.mxu0 }
 0x22a   : > { %v5513_v33 = vpop.f32.mrf.mxu1 }
 0x22b   : > { %v5515_v27 = vpop.f32.mrf.mxu0  ;;  %v1859_v43 = vadd.f32 %v5513_v33, %v5457_v14 }
 0x22c   : > { %v5517_v18 = vpop.f32.mrf.mxu1 }
 0x22d   : > { %v5519_v46 = vpop.f32.mrf.mxu0 }
 0x22e   : > { %v5521_v51 = vpop.f32.mrf.mxu1 }
 0x22f   : > { %v5523_v16 = vpop.f32.mrf.mxu0 }
 0x230   : > { %v5525_v48 = vpop.f32.mrf.mxu1 }
 0x231   : > { %5799 = vst [vmem:[#allocation13_spill] sm:$0xff] %v5525_v48  ;;  %v5527_v37 = vpop.f32.mrf.mxu0 }
 0x232   : > { %5800 = vst [vmem:[#allocation14_spill] sm:$0xff] %v5527_v37  ;;  %v5529_v11 = vpop.f32.mrf.mxu1 }
 0x233   : > { %5801 = vst [vmem:[#allocation15_spill] sm:$0xff] %v5529_v11  ;;  %v5531_v24 = vpop.f32.mrf.mxu0 }
 0x234   : > { %5802 = vst [vmem:[#allocation16_spill] sm:$0xff] %v5531_v24  ;;  %v5533_v29 = vpop.f32.mrf.mxu1 }
 0x235   : > { %5803 = vst [vmem:[#allocation17_spill] sm:$0xff] %v5533_v29  ;;  %v5535_v9 = vpop.f32.mrf.mxu0 }
 0x236   : > { %5804 = vst [vmem:[#allocation18_spill] sm:$0xff] %v5535_v9  ;;  %v5537_v30 = vpop.f32.mrf.mxu1 }
 0x237   : > { %5805 = vst [vmem:[#allocation19_spill] sm:$0xff] %v5537_v30  ;;  %v5539_v62 = vpop.f32.mrf.mxu0 }
 0x238   : > { %5806 = vst [vmem:[#allocation20_spill] sm:$0xff] %v5539_v62  ;;  %v4164_v47 = vpop.f32.mrf.mxu1 }
 0x239   : > { %v5541_v32 = vpop.f32.mrf.mxu0 }
 0x23a   : > { %5807 = vst [vmem:[#allocation21_spill] sm:$0xff] %v5541_v32  ;;  %v2424_v60 = vpop.f32.mrf.mxu1 }
 0x23b   : > { %v5543_v58 = vpop.f32.mrf.mxu0 }
 0x23c   : > { %5808 = vst [vmem:[#allocation22_spill] sm:$0xff] %v5543_v58  ;;  %v4165_v38 = vpop.f32.mrf.mxu1 }
 0x23d   : > { %v5545_v40 = vpop.f32.mrf.mxu0 }
 0x23e   : > { %5809 = vst [vmem:[#allocation23_spill] sm:$0xff] %v5545_v40  ;;  %v2427_v34 = vpop.f32.mrf.mxu1 }
 0x23f   : > { %v5547_v44 = vpop.f32.mrf.mxu0 }
 0x240   : > { %5810 = vst [vmem:[#allocation24_spill] sm:$0xff] %v5547_v44  ;;  %v4168_v59 = vpop.f32.mrf.mxu1  ;;  %v1853_v44 = vadd.f32 %v4128_v15, %v5421_v4  ;;  %v1857_v15 = vadd.f32 %v4132_v61, %v5433_v20 }
 0x241   : > { %v5549_v1 = vpop.f32.mrf.mxu0 }
 0x242   : > { %5811 = vst [vmem:[#allocation25_spill] sm:$0xff] %v5549_v1  ;;  %v2440_v57 = vpop.f32.mrf.mxu1  ;;  %v2235_v5 = vadd.f32 %v5440_v17, %v1853_v44  ;;  %v2239_v20 = vadd.f32 %v5459_v26, %v1857_v15  ;;  %v1861_v26 = vadd.f32 %v5509_v52, %v5453_v63 }
 0x243   : > { %v5551_v29 = vpop.f32.mrf.mxu0 }
 0x244   : > { %5812 = vst [vmem:[#allocation26_spill] sm:$0xff] %v5551_v29  ;;  %v4169_v30 = vpop.f32.mrf.mxu1  ;;  %v1851_v29 = vadd.f32 %v1788_v41, %v5424_v21  ;;  %v2489_v37 = vadd.f32 %v4164_v47, %v2235_v5 }
 0x245   : > { %v4218_v7 = vpop.f32.mrf.mxu0 }
 0x246   : > { %v5553_v62 = vpop.f32.mrf.mxu1  ;;  %v2233_v4 = vadd.f32 %v5444_v36, %v1851_v29  ;;  %v1858_v36 = vadd.f32 %v5503_v19, %v5438_v10  ;;  %v2491_v19 = vadd.f32 %v2440_v57, %v2237_v6 }
 0x247   : > { %v3259_v32 = vpop.f32.mrf.mxu0 }
 0x248   : > { %v5555_v9 = vpop.f32.mrf.mxu1  ;;  %v2487_v41 = vadd.f32 %v2424_v60, %v2233_v4 }
 0x249   : > { %v4219_v58 = vpop.f32.mrf.mxu0 }
 0x24a   : > { %v5557_v49 = vpop.f32.mrf.mxu1 }
 0x24b   : > { %5813 = vst [vmem:[#allocation27_spill] sm:$0xff] %v5557_v49  ;;  %v5559_v40 = vpop.f32.mrf.mxu0 }
 0x24c   : > { %v5561_v11 = vpop.f32.mrf.mxu1 }
 0x24d   : > { %5814 = vst [vmem:[#allocation28_spill] sm:$0xff] %v5561_v11  ;;  %v5564_v1 = vpop.f32.mrf.mxu0  ;;  %v1852_v11 = vadd.f32 %v1791_v45, %v5428_v35  ;;  %v2688_v35 = vadd.f32 %v4182_v42, %v2489_v37 }
 0x24e   : > { %v5566_v28 = vpop.f32.mrf.mxu1 }
 0x24f   : > { %5815 = vst [vmem:[#allocation29_spill] sm:$0xff] %v5566_v28  ;;  %v5569_v24 = vpop.f32.mrf.mxu0  ;;  %v2234_v44 = vadd.f32 %v5451_v39, %v1852_v11 }
 0x250   : > { %v5571_v48 = vpop.f32.mrf.mxu1 }
 0x251   : > { %5816 = vst [vmem:[#allocation30_spill] sm:$0xff] %v5571_v48  ;;  %v5580_v28 = vpop.f32.mrf.mxu0  ;;  %v2236_v48 = vadd.f32 %v5447_v12, %v1854_v0  ;;  %v2488_v61 = vadd.f32 %v2427_v34, %v2234_v44  ;;  %v2686_v12 = vadd.f32 %v5507_v54, %v2487_v41  ;;  %v2493_v0 = vadd.f32 %v4168_v59, %v2239_v20 }
 0x252   : > { %v5575_v49 = vpop.f32.mrf.mxu1  ;;  %v2240_v34 = vadd.f32 %v5467_v53, %v1858_v36 }
 0x253   : > { %v2490_v17 = vadd.f32 %v4165_v38, %v2236_v48  ;;  %v5592_v5 = vpop.f32.mrf.mxu0  ;;  %v2687_v13 = vadd.f32 %v5515_v27, %v2488_v61  ;;  %v2692_v47 = vadd.f32 %v5519_v46, %v2493_v0  ;;  %v1862_v27 = vadd.f32 %v5517_v18, %v5461_v55  ;;  %v5824_v61 = vld [vmem:[#allocation15_spill] sm:$0xff]  ;;  %v5826_v0 = vld [vmem:[#allocation8_spill] sm:$0xff] }
 0x254   : > { %v5582_v21 = vpop.f32.mrf.mxu1  ;;  %v2494_v63 = vadd.f32 %v4169_v30, %v2240_v34  ;;  %v1860_v38 = vadd.f32 %v5521_v51, %v5463_v25  ;;  %v5820_v25 = vld [vmem:[#allocation3_spill] sm:$0xff]  ;;  %v5821_v51 = vld [vmem:[#allocation13_spill] sm:$0xff] }
 0x255   : > { %v2689_v48 = vadd.f32 %v5511_v50, %v2490_v17  ;;  %v5602_v37 = vpop.f32.mrf.mxu0  ;;  %v2238_v50 = vadd.f32 %v5473_v56, %v1856_v22  ;;  %v2690_v56 = vadd.f32 %v5523_v16, %v2491_v19  ;;  %v5819_v17 = vld [vmem:[#allocation6_spill] sm:$0xff] }
 0x256   : > { %v5586_v2 = vpop.f32.mrf.mxu1  ;;  %v2244_v44 = vadd.f32 %v5819_v17, %v1862_v27  ;;  %v2242_v6 = vadd.f32 %v5826_v0, %v1860_v38  ;;  %v5842_v0 = vld [vmem:[#allocation24_spill] sm:$0xff] }
 0x257   : > { %v5613_v60 = vpop.f32.mrf.mxu0  ;;  %v2492_v33 = vadd.f32 %v5553_v62, %v2238_v50  ;;  %v5817_v62 = vld [vmem:[#allocation14_spill] sm:$0xff] }
 0x258   : > { %v4200_v45 = vpop.f32.mrf.mxu1  ;;  %v2693_v41 = vadd.f32 %v5817_v62, %v2494_v63  ;;  %v5830_v63 = vld [vmem:[#allocation5_spill] sm:$0xff] }
 0x259   : > { %v3070_v29 = vadd.f32 %v4200_v45, %v2688_v35  ;;  %v4227_v35 = vpop.f32.mrf.mxu0 }
 0x25a   : > { %v3005_v39 = vpop.f32.mrf.mxu1 }
 0x25b   : > { %v3068_v42 = vadd.f32 %v3005_v39, %v2686_v12  ;;  %v3324_v10 = vadd.f32 %v4218_v7, %v3070_v29  ;;  %v5825_v12 = vld [vmem:[#allocation28_spill] sm:$0xff] }
 0x25c   : > { %v4201_v54 = vpop.f32.mrf.mxu1  ;;  %v2498_v22 = vadd.f32 %v5825_v12, %v2244_v44 }
 0x25d   : > { %v3071_v11 = vadd.f32 %v4201_v54, %v2689_v48  ;;  %v3340_v59 = vmax.f32 %v3324_v10, 0.0  ;;  %v3322_v3 = vadd.f32 %v3259_v32, %v3068_v42  ;;  %v2243_v32 = vadd.f32 %v5481_v31, %v1861_v26  ;;  %v5827_v42 = vld [vmem:[#allocation18_spill] sm:$0xff]  ;;  %v3294_v54 = vpop.f32.mrf.mxu0 }
 0x25e   : > { %v3008_v7 = vpop.f32.mrf.mxu1  ;;  %v2241_v31 = vadd.f32 %v5485_v8, %v1859_v43  ;;  %v5822_v8 = vld [vmem:[#allocation16_spill] sm:$0xff] }
 0x25f   : > { %v3325_v57 = vadd.f32 %v4219_v58, %v3071_v11  ;;  %v3069_v52 = vadd.f32 %v3008_v7, %v2687_v13  ;;  %3498 = vrot.lane.b32.xlu1 %v3340_v59, %s4369_s20  ;;  %v3338_v53 = vmax.f32 %v3322_v3, 0.0  ;;  %v2497_v55 = vadd.f32 %v5555_v9, %v2243_v32  ;;  %v5828_v13 = vld [vmem:[#allocation20_spill] sm:$0xff]  ;;  %v5829_v3 = vld [vmem:[#allocation29_spill] sm:$0xff] }
 0x260   : > { %v4204_v14 = vpop.f32.mrf.mxu1  ;;  %v1865_v9 = vadd.f32 %v5821_v51, %v5820_v25  ;;  %v2691_v45 = vadd.f32 %v5822_v8, %v2492_v33  ;;  %v2496_v43 = vadd.f32 %v5829_v3, %v2242_v6 }
 0x261   : > { %v3341_v46 = vmax.f32 %v3325_v57, 0.0  ;;  %v3323_v30 = vadd.f32 %v5559_v40, %v3069_v52  ;;  %v3074_v58 = vadd.f32 %v4204_v14, %v2692_v47  ;;  %3494 = vrot.lane.b32.xlu0 %v3338_v53, %s4369_s20  ;;  %v5818_v40 = vld [vmem:[#allocation27_spill] sm:$0xff]  ;;  %v2696_v48 = vadd.f32 %v5827_v42, %v2497_v55  ;;  %v5831_v57 = vld [vmem:[#allocation17_spill] sm:$0xff]  ;;  %v5835_v14 = vld [vmem:[#allocation10_spill] sm:$0xff] }
 0x262   : > { %v3021_v18 = vpop.f32.mrf.mxu1  ;;  %v2495_v23 = vadd.f32 %v5818_v40, %v2241_v31  ;;  %v1866_v52 = vadd.f32 %v5831_v57, %v5830_v63  ;;  %v5832_v53 = vld [vmem:[#allocation7_spill] sm:$0xff]  ;;  %v5837_v55 = vld [vmem:[#allocation30_spill] sm:$0xff] }
 0x263   : > { %v3339_v4 = vmax.f32 %v3323_v30, 0.0  ;;  %v3328_v15 = vadd.f32 %v5564_v1, %v3074_v58  ;;  %v3072_v16 = vadd.f32 %v3021_v18, %v2690_v56  ;;  %3500 = vrot.lane.b32.xlu1 %v3341_v46, %s4369_s20  ;;  %v5823_v1 = vld [vmem:[#allocation4_spill] sm:$0xff]  ;;  %v4230_v18 = vpop.f32.mrf.mxu0 }
 0x264   : > { %v4205_v36 = vpop.f32.mrf.mxu1  ;;  %v1863_v29 = vadd.f32 %v5824_v61, %v5823_v1  ;;  %v2694_v59 = vadd.f32 %v5828_v13, %v2495_v23  ;;  %v5839_v23 = vld [vmem:[#allocation11_spill] sm:$0xff] }
 0x265   : > { %v3075_v20 = vadd.f32 %v4205_v36, %v2693_v41  ;;  %3496 = vrot.lane.b32.xlu0 %v3339_v4, %s4369_s20  ;;  %v3344_v10 = vmax.f32 %v3328_v15, 0.0  ;;  %v3326_v26 = vadd.f32 %v5569_v24, %v3072_v16  ;;  %v5833_v24 = vld [vmem:[#allocation19_spill] sm:$0xff]  ;;  %v5838_v41 = vld [vmem:[#allocation22_spill] sm:$0xff]  ;;  %v2248_v17 = vadd.f32 %v5839_v23, %v1866_v52  ;;  %v3307_v8 = vpop.f32.mrf.mxu0 }
 0x266   : > { %v3024_v39 = vpop.f32.mrf.mxu1  ;;  %v1864_v27 = vadd.f32 %v5833_v24, %v5832_v53  ;;  %v2245_v56 = vadd.f32 %v5835_v14, %v1863_v29  ;;  %v2695_v40 = vadd.f32 %v5838_v41, %v2496_v43 }
 0x267   : > { %v3329_v19 = vadd.f32 %v5580_v28, %v3075_v20  ;;  %v3073_v34 = vadd.f32 %v3024_v39, %v2691_v45  ;;  %v5834_v28 = vld [vmem:[#allocation9_spill] sm:$0xff]  ;;  %v3342_v46 = vmax.f32 %v3326_v26, 0.0  ;;  %v5841_v45 = vld [vmem:[#allocation23_spill] sm:$0xff] }
 0x268   : > { %v4208_v11 = vpop.f32.mrf.mxu1  ;;  %v2247_v32 = vadd.f32 %v5834_v28, %v1865_v9  ;;  %v2499_v15 = vadd.f32 %v5575_v49, %v2245_v56  ;;  %v2502_v49 = vadd.f32 %v5582_v21, %v2248_v17 }
 0x269   : > { %v3345_v50 = vmax.f32 %v3329_v19, 0.0  ;;  %v3327_v7 = vadd.f32 %v5592_v5, %v3073_v34  ;;  %v3078_v47 = vadd.f32 %v4208_v11, %v2696_v48  ;;  %3506 = vrot.lane.b32.xlu0 %v3344_v10, %s4369_s20  ;;  %v5836_v5 = vld [vmem:[#allocation21_spill] sm:$0xff]  ;;  %v4231_v48 = vpop.f32.mrf.mxu0 }
 0x26a   : > { %v3037_v33 = vpop.f32.mrf.mxu1  ;;  %v2697_v38 = vadd.f32 %v5836_v5, %v2498_v22  ;;  %v2501_v31 = vadd.f32 %v5837_v55, %v2247_v32  ;;  %v2698_v6 = vadd.f32 %v5842_v0, %v2499_v15  ;;  %v5843_v19 = vld [vmem:[#allocation25_spill] sm:$0xff] }
 0x26b   : > { %v3332_v30 = vadd.f32 %v5602_v37, %v3078_v47  ;;  %v3076_v58 = vadd.f32 %v3037_v33, %v2694_v59  ;;  %3508 = vrot.lane.b32.xlu1 %v3345_v50, %s4369_s20  ;;  %v3343_v16 = vmax.f32 %v3327_v7, 0.0  ;;  %v5840_v37 = vld [vmem:[#allocation12_spill] sm:$0xff]  ;;  %v2701_v34 = vadd.f32 %v5843_v19, %v2502_v49  ;;  %v3310_v50 = vpop.f32.mrf.mxu0 }
 0x26c   : > { %v4209_v4 = vpop.f32.mrf.mxu1  ;;  %v2246_v44 = vadd.f32 %v5840_v37, %v1864_v27  ;;  %v2700_v1 = vadd.f32 %v5841_v45, %v2501_v31 }
 0x26d   : > { %v3079_v62 = vadd.f32 %v4209_v4, %v2697_v38  ;;  %3502 = vrot.lane.b32.xlu0 %v3342_v46, %s4369_s20  ;;  %v3348_v25 = vmax.f32 %v3332_v30, 0.0  ;;  %v3330_v51 = vadd.f32 %v5613_v60, %v3076_v58  ;;  %v5677_v46 = vld [vmem:[%s5768_s4] ss:$0 sm:$0xff] }
 0x26e   : > { %v3040_v36 = vpop.f32.mrf.mxu1  ;;  %v2500_v29 = vadd.f32 %v5586_v2, %v2246_v44  ;;  %v5844_v2 = vld [vmem:[#allocation26_spill] sm:$0xff] }
 0x26f   : > { %v3333_v9 = vadd.f32 %v4227_v35, %v3079_v62  ;;  %v3077_v20 = vadd.f32 %v3040_v36, %v2695_v40  ;;  %3504 = vrot.lane.b32.xlu1 %v3343_v16, %s4369_s20  ;;  %v3346_v60 = vmax.f32 %v3330_v51, 0.0 }
 0x270   : > { %v4212_v61 = vpop.f32.mrf.mxu1 }
 0x271   : > { %v3349_v12 = vmax.f32 %v3333_v9, 0.0  ;;  %v3331_v22 = vadd.f32 %v3294_v54, %v3077_v20  ;;  %3514 = vrot.lane.b32.xlu0 %v3348_v25, %s4369_s20  ;;  %v3082_v35 = vadd.f32 %v4212_v61, %v2700_v1  ;;  %v2699_v54 = vadd.f32 %v5844_v2, %v2500_v29 }
 0x272   : > { %v3053_v39 = vpop.f32.mrf.mxu1 }
 0x273   : > { %v3080_v42 = vadd.f32 %v3053_v39, %v2698_v6  ;;  %3516 = vrot.lane.b32.xlu1 %v3349_v12, %s4369_s20  ;;  %v3347_v10 = vmax.f32 %v3331_v22, 0.0  ;;  %v3336_v13 = vadd.f32 %v4230_v18, %v3082_v35 }
 0x274   : > { %v4213_v21 = vpop.f32.mrf.mxu1 }
 0x275   : > { %v3334_v26 = vadd.f32 %v3307_v8, %v3080_v42  ;;  %3510 = vrot.lane.b32.xlu0 %v3346_v60, %s4369_s20  ;;  %v3083_v3 = vadd.f32 %v4213_v21, %v2701_v34  ;;  %v3352_v47 = vmax.f32 %v3336_v13, 0.0 }
 0x276   : > { %v3056_v11 = vpop.f32.mrf.mxu1 }
 0x277   : > { %v3350_v59 = vmax.f32 %v3334_v26, 0.0  ;;  %v3081_v43 = vadd.f32 %v3056_v11, %v2699_v54  ;;  %3512 = vrot.lane.b32.xlu1 %v3347_v10, %s4369_s20  ;;  %v3337_v63 = vadd.f32 %v4231_v48, %v3083_v3 }
 0x278   : > { %v4236_v53 = vpop.f32.mrf.mxu1 }
 0x279   : > { %v3335_v7 = vadd.f32 %v3310_v50, %v3081_v43  ;;  %3518 = vrot.lane.b32.xlu0 %v3350_v59, %s4369_s20  ;;  %v3353_v52 = vmax.f32 %v3337_v63, 0.0  ;;  %v3408_v58 = vadd.f32 %v4236_v53, %v5677_v46 }
 0x27a   : > { %v3399_v24 = vpop.f32.mrf.mxu1 }
 0x27b   : > { %v3351_v57 = vmax.f32 %v3335_v7, 0.0  ;;  %v3400_v5 = vadd.f32 %v5677_v46, %v3399_v24  ;;  %v3464_v55 = vmax.f32 %v3408_v58, 0.0 }
 0x27c   : > { %v4237_v27 = vpop.f32.mrf.mxu1 }
 0x27d   : > { %3520 = vrot.lane.b32.xlu1 %v3351_v57, %s4369_s20  ;;  %3522 = vrot.lane.b32.xlu0 %v3352_v47, %s4369_s20  ;;  %v3411_v31 = vadd.f32 %v4237_v27, %v5677_v46  ;;  %v3462_v4 = vmax.f32 %v3400_v5, 0.0 }
 0x27e   : > { %v3402_v28 = vpop.f32.mrf.mxu1 }
 0x27f   : > { %v3403_v15 = vadd.f32 %v5677_v46, %v3402_v28  ;;  %v3465_v40 = vmax.f32 %v3411_v31, 0.0 }
 0x280   : > { %v4240_v32 = vpop.f32.mrf.mxu1 }
 0x281   : > { %3524 = vrot.lane.b32.xlu1 %v3353_v52, %s4369_s20  ;;  %v3463_v37 = vmax.f32 %v3403_v15, 0.0  ;;  %v3424_v44 = vadd.f32 %v4240_v32, %v5677_v46 }
 0x282   : > { %v3415_v14 = vpop.f32.mrf.mxu1 }
 0x283   : > { %v3468_v49 = vmax.f32 %v3424_v44, 0.0  ;;  %v3416_v8 = vadd.f32 %v5677_v46, %v3415_v14 }
 0x284   : > { %v4241_v56 = vpop.f32.mrf.mxu1 }
 0x285   : > { %v3427_v9 = vadd.f32 %v4241_v56, %v5677_v46  ;;  %v3466_v0 = vmax.f32 %v3416_v8, 0.0 }
 0x286   : > { %v3418_v33 = vpop.f32.mrf.mxu1 }
 0x287   : > { %v3469_v61 = vmax.f32 %v3427_v9, 0.0  ;;  %v3419_v29 = vadd.f32 %v5677_v46, %v3418_v33 }
 0x288   : > { %v4244_v30 = vpop.f32.mrf.mxu1 }
 0x289   : > { %v3440_v6 = vadd.f32 %v4244_v30, %v5677_v46  ;;  %v3467_v42 = vmax.f32 %v3419_v29, 0.0 }
 0x28a   : > { %v3431_v38 = vpop.f32.mrf.mxu1 }
 0x28b   : > { %v3472_v26 = vmax.f32 %v3440_v6, 0.0  ;;  %v3432_v19 = vadd.f32 %v5677_v46, %v3431_v38 }
 0x28c   : > { %v4245_v62 = vpop.f32.mrf.mxu1 }
 0x28d   : > { %v3443_v48 = vadd.f32 %v4245_v62, %v5677_v46  ;;  %v3470_v43 = vmax.f32 %v3432_v19, 0.0 }
 0x28e   : > { %v3434_v25 = vpop.f32.mrf.mxu1 }
 0x28f   : > { %v3473_v11 = vmax.f32 %v3443_v48, 0.0  ;;  %v3435_v13 = vadd.f32 %v5677_v46, %v3434_v25 }
 0x290   : > { %v4248_v45 = vpop.f32.mrf.mxu1 }
 0x291   : > { %v3471_v57 = vmax.f32 %v3435_v13, 0.0  ;;  %v3456_v24 = vadd.f32 %v4248_v45, %v5677_v46 }
 0x292   : > { %v3447_v60 = vpop.f32.mrf.mxu1 }
 0x293   : > { %v3448_v50 = vadd.f32 %v5677_v46, %v3447_v60  ;;  %v3476_v33 = vmax.f32 %v3456_v24, 0.0 }
 0x294   : > { %v4249_v2 = vpop.f32.mrf.mxu1 }
 0x295   : > { %v3474_v27 = vmax.f32 %v3448_v50, 0.0  ;;  %v3459_v30 = vadd.f32 %v4249_v2, %v5677_v46 }
 0x296   : > { %v3450_v47 = vpop.f32.mrf.mxu1 }
 0x297   : > { %v3451_v28 = vadd.f32 %v5677_v46, %v3450_v47 }
 0x299   : > { %v3475_v58 = vmax.f32 %v3451_v28, 0.0 }
 0x2d1   : > { %v3499_v18 = vpop.permute.xlu1 %3498 }
 0x2d2   : > { %v3544_v16 = vsel %vm884_vm7, %v3464_v55, %v3499_v18  ;;  %v3477_v18 = vmax.f32 %v3459_v30, 0.0 }
 0x2d3   : > { %3560 = vst.msk [vmem:[%s5685_s9 + $0x10] sm:$0xff] %vm356_vm1, %v3544_v16  ;;  %v3495_v41 = vpop.permute.xlu0 %3494 }
 0x2d4   : > { %v3542_v23 = vsel %vm884_vm7, %v3462_v4, %v3495_v41 }
 0x2d5   : > { %3558 = vst.msk [vmem:[%s5685_s9] sm:$0xff] %vm356_vm1, %v3542_v23  ;;  %v3501_v17 = vpop.permute.xlu1 %3500 }
 0x2d6   : > { %v3545_v36 = vsel %vm884_vm7, %v3465_v40, %v3501_v17 }
 0x2d7   : > { %3561 = vst.msk [vmem:[%s5685_s9 + $0x18] sm:$0xff] %vm356_vm1, %v3545_v36  ;;  %v3497_v51 = vpop.permute.xlu0 %3496 }
 0x2d8   : > { %v3543_v20 = vsel %vm884_vm7, %v3463_v37, %v3497_v51 }
 0x2d9   : > { %3559 = vst.msk [vmem:[%s5685_s9 + $0x8] sm:$0xff] %vm356_vm1, %v3543_v20 }
 0x2db   : > { %v3507_v1 = vpop.permute.xlu0 %3506 }
 0x2dc   : > { %v3548_v12 = vsel %vm884_vm7, %v3468_v49, %v3507_v1 }
 0x2dd   : > { %3564 = vst.msk [vmem:[%s5685_s9 + $0x30] sm:$0xff] %vm356_vm1, %v3548_v12  ;;  %v3509_v22 = vpop.permute.xlu1 %3508 }
 0x2de   : > { %v3549_v39 = vsel %vm884_vm7, %v3469_v61, %v3509_v22 }
 0x2df   : > { %3565 = vst.msk [vmem:[%s5685_s9 + $0x38] sm:$0xff] %vm356_vm1, %v3549_v39  ;;  %v3503_v35 = vpop.permute.xlu0 %3502 }
 0x2e0   : > { %v3546_v21 = vsel %vm884_vm7, %v3466_v0, %v3503_v35 }
 0x2e1   : > { %3562 = vst.msk [vmem:[%s5685_s9 + $0x20] sm:$0xff] %vm356_vm1, %v3546_v21  ;;  %v3505_v10 = vpop.permute.xlu1 %3504 }
 0x2e2   : > { %v3547_v34 = vsel %vm884_vm7, %v3467_v42, %v3505_v10 }
 0x2e3   : > { %3563 = vst.msk [vmem:[%s5685_s9 + $0x28] sm:$0xff] %vm356_vm1, %v3547_v34  ;;  %v3515_v54 = vpop.permute.xlu0 %3514 }
 0x2e4   : > { %v3552_v59 = vsel %vm884_vm7, %v3472_v26, %v3515_v54 }
 0x2e5   : > { %3568 = vst.msk [vmem:[%s5685_s9 + $0x50] sm:$0xff] %vm356_vm1, %v3552_v59  ;;  %v3517_v3 = vpop.permute.xlu1 %3516 }
 0x2e6   : > { %v3553_v7 = vsel %vm884_vm7, %v3473_v11, %v3517_v3 }
 0x2e7   : > { %3569 = vst.msk [vmem:[%s5685_s9 + $0x58] sm:$0xff] %vm356_vm1, %v3553_v7  ;;  %v3511_v63 = vpop.permute.xlu0 %3510 }
 0x2e8   : > { %v3550_v52 = vsel %vm884_vm7, %v3470_v43, %v3511_v63 }
 0x2e9   : > { %3566 = vst.msk [vmem:[%s5685_s9 + $0x40] sm:$0xff] %vm356_vm1, %v3550_v52  ;;  %v3513_v53 = vpop.permute.xlu1 %3512 }
 0x2ea   : > { %v3551_v32 = vsel %vm884_vm7, %v3471_v57, %v3513_v53 }
 0x2eb   : > { %3567 = vst.msk [vmem:[%s5685_s9 + $0x48] sm:$0xff] %vm356_vm1, %v3551_v32  ;;  %v3519_v14 = vpop.permute.xlu0 %3518 }
 0x2ec   : > { %v3554_v56 = vsel %vm884_vm7, %v3474_v27, %v3519_v14 }
 0x2ed   : > { %3570 = vst.msk [vmem:[%s5685_s9 + $0x60] sm:$0xff] %vm356_vm1, %v3554_v56 }
 0x2ef   : > { %v3521_v5 = vpop.permute.xlu1 %3520  ;;  %v3523_v38 = vpop.permute.xlu0 %3522 }
 0x2f0   : > { %v3555_v55 = vsel %vm884_vm7, %v3475_v58, %v3521_v5  ;;  %v3556_v31 = vsel %vm884_vm7, %v3476_v33, %v3523_v38 }
 0x2f1   : > { %3571 = vst.msk [vmem:[%s5685_s9 + $0x68] sm:$0xff] %vm356_vm1, %v3555_v55  ;;  %3572 = vst.msk [vmem:[%s5685_s9 + $0x70] sm:$0xff] %vm356_vm1, %v3556_v31 }
 0x2f3   : > { %v3525_v4 = vpop.permute.xlu1 %3524 }
 0x2f4   : > { %v3557_v15 = vsel %vm884_vm7, %v3477_v18, %v3525_v4 }
 0x2f5   : > { %3573 = vst.msk [vmem:[%s5685_s9 + $0x78] sm:$0xff] %vm356_vm1, %v3557_v15 }
 0x2f6 PF: > { %s17_s28 = sadd.s32 1, %s4367_s28   ;;  %s5845_s24 = smov %s4359_s26 }
 0x2f7   : > { %p14_p11 = scmp.ge.s32.totalorder %s17_s28, 6   ;;  %s5846_s25 = smov %s4363_s27 }
 0x2f8   : > { %s5847_s26 = smov %s5850_s29  ;;  %s5848_s27 = smov %s5854_s30 }
 0x2f9   :  { %16 = sbr.rel (!%p14_p11) target bundleno = 3 (0x3), region = 91 }

</bundles_post_ra>
